<compile_context>
chip_gen: v5e
topology: v5e:2x2
jax: 0.10.0
libtpu: 0.0.40
codegen_flags: <defaults>
</compile_context>

<pallas_src>
import functools

import jax
import jax.numpy as jnp
from jax.experimental import pallas as pl
from jax.experimental.pallas import tpu as pltpu

LN_EPS = 1e-5


def _layernorm_f32(x, w, b):
    # x: (M, C) f32; w, b: (1, C) f32  -- biased variance, eps inside rsqrt
    mean = jnp.mean(x, axis=-1, keepdims=True)
    xc = x - mean
    var = jnp.mean(xc * xc, axis=-1, keepdims=True)
    inv = jax.lax.rsqrt(var + LN_EPS)
    return xc * inv * w + b


def transformer_layer_kernel(
    x_ref,                 # (Bt, N, C) f32 activations for this batch tile
    ln1w_ref, ln1b_ref,    # (1, C) f32
    wqkv_ref,              # (C, 3C) bf16  [Q | K | V], Q pre-scaled by D**-0.5
    wo_ref,                # (C, C) bf16   output projection
    bo_ref,                # (1, C) f32    output-projection bias
    ln2w_ref, ln2b_ref,    # (1, C) f32
    w1_ref, b1_ref,        # (C, Hm) bf16, (1, Hm) f32
    w2_ref, b2_ref,        # (Hm, C) bf16, (1, C) f32
    o_ref,                 # (Bt, N, C) f32
    *,
    num_heads: int,
):
    Bt, N, C = x_ref.shape
    H = num_heads
    D = C // H
    M = Bt * N

    # Fold batch into the matmul M dimension.
    x = x_ref[...].astype(jnp.float32).reshape(M, C)

    # ---- attention branch: x + proj(attn(norm1(x))) ----
    xn1 = _layernorm_f32(x, ln1w_ref[...], ln1b_ref[...]).astype(jnp.bfloat16)

    # Single fused full-width / full-depth QKV projection (one MXU pass).
    qkv = jnp.dot(xn1, wqkv_ref[...], preferred_element_type=jnp.float32)  # (M, 3C)

    # Per-head attention, Python-unrolled (H is small and static).
    # The scale D**-0.5 is already folded into the Q columns of wqkv.
    # TODO(synk): use lax.fori_loop over heads when H >= 8 to bound vreg live
    # ranges; and key-tiled online softmax for long sequences.
    head_outs = []
    for h in range(H):
        q3 = qkv[:, h * D:(h + 1) * D].reshape(Bt, N, D).astype(jnp.bfloat16)
        k3 = qkv[:, C + h * D:C + (h + 1) * D].reshape(Bt, N, D).astype(jnp.bfloat16)
        v3 = qkv[:, 2 * C + h * D:2 * C + (h + 1) * D].reshape(Bt, N, D).astype(jnp.bfloat16)

        # Scores batched over the folded batch dim (flash-attention einsum
        # pattern: single leading batch dim, no in-kernel transposes).
        s = jnp.einsum("bnd,bmd->bnm", q3, k3,
                       preferred_element_type=jnp.float32)                 # (Bt, N, N)
        s_max = jnp.max(s, axis=-1, keepdims=True)
        e = jnp.exp(s - s_max)
        denom = jnp.sum(e, axis=-1, keepdims=True)
        p = (e * pl.reciprocal(denom, approx=True)).astype(jnp.bfloat16)   # softmax

        o3 = jnp.einsum("bnm,bmd->bnd", p, v3,
                        preferred_element_type=jnp.float32)                # (Bt, N, D)
        head_outs.append(o3.reshape(M, D))

    # Reassemble heads along lanes (matches the PyTorch reshape ordering) and
    # run ONE full contraction-depth output projection instead of H partial
    # K=D accumulations.
    attn = jnp.concatenate(head_outs, axis=-1).astype(jnp.bfloat16)        # (M, C)
    attn_out = jnp.dot(attn, wo_ref[...],
                       preferred_element_type=jnp.float32) + bo_ref[...]
    x = x + attn_out

    # ---- mlp branch: x + fc2(relu(fc1(norm2(x)))) ----
    # TODO(synk): tile the MLP over Hm chunks for very large N / Hm to cap the
    # live hidden buffer on 64 MiB (v7x) VMEM.
    xn2 = _layernorm_f32(x, ln2w_ref[...], ln2b_ref[...]).astype(jnp.bfloat16)
    h1 = jnp.dot(xn2, w1_ref[...], preferred_element_type=jnp.float32) + b1_ref[...]
    h1 = jnp.maximum(h1, 0.0).astype(jnp.bfloat16)                         # relu
    h2 = jnp.dot(h1, w2_ref[...], preferred_element_type=jnp.float32) + b2_ref[...]
    x = x + h2

    o_ref[...] = x.reshape(Bt, N, C).astype(o_ref.dtype)


def _est_vmem_bytes(Bt, N, C, Hm, H):
    """Rough upper bound on resident VMEM for one grid step."""
    M = Bt * N
    D = C // H
    # bf16 weights (single-buffered) + small f32 vectors
    weights = 2 * (3 * C * C + C * C + C * Hm + Hm * C) + 4 * (8 * C + 2 * Hm)
    # pipelined activation blocks: x in + out, double-buffered, f32
    blocks = 4 * M * C * 4
    # f32/bf16 intermediates: x, xn1, qkv, head outputs, attn_out, mlp hidden,
    # per-head scores/exp/probs, output staging.
    inter = (M * C * 36 + M * Hm * 6 + Bt * N * N * 12 + 3 * Bt * N * D * 2)
    return int(1.2 * (weights + blocks + inter))


def _pick_batch_tile(B, N, C, Hm, H, budget_bytes=36 * 2**20):
    """Largest batch tile whose working set fits the VMEM budget, keeping at
    least 2 grid steps when possible so both v7x TensorCores get work."""
    cands = [d for d in range(1, B + 1) if B % d == 0]
    if B >= 2:
        two_step = [d for d in cands if B // d >= 2]
        if two_step:
            cands = two_step
    bt = 1
    for d in cands:
        if _est_vmem_bytes(d, N, C, Hm, H) <= budget_bytes:
            bt = max(bt, d)
    return bt


def _const_spec(shape):
    idx_map = lambda b: (0,) * len(shape)
    # Weights use constant index maps: single-buffer them (they are fetched
    # once and reused every grid step), halving their resident VMEM footprint.
    try:
        return pl.BlockSpec(shape, idx_map, pipeline_mode=pl.Buffered(1))
    except (TypeError, AttributeError):
        return pl.BlockSpec(shape, idx_map)


def apply_layer(x, kp, num_heads, batch_tile=None):
    B, N, C = x.shape
    H = num_heads
    Hm = kp["w1"].shape[1]
    Bt = batch_tile if batch_tile is not None else _pick_batch_tile(B, N, C, Hm, H)
    assert B % Bt == 0

    in_specs = [
        pl.BlockSpec((Bt, N, C), lambda b: (b, 0, 0)),            # x (batch tiled)
        _const_spec((1, C)), _const_spec((1, C)),                 # ln1 w, b
        _const_spec((C, 3 * C)),                                  # wqkv
        _const_spec((C, C)), _const_spec((1, C)),                 # wo, bo
        _const_spec((1, C)), _const_spec((1, C)),                 # ln2 w, b
        _const_spec((C, Hm)), _const_spec((1, Hm)),               # w1, b1
        _const_spec((Hm, C)), _const_spec((1, C)),                # w2, b2
    ]
    out_specs = pl.BlockSpec((Bt, N, C), lambda b: (b, 0, 0))

    operands = (kp["ln1_w"], kp["ln1_b"],
                kp["wqkv"],
                kp["wo"], kp["bproj"],
                kp["ln2_w"], kp["ln2_b"],
                kp["w1"], kp["b1"], kp["w2"], kp["b2"])

    # Explicit VMEM budget, capped at 48 MiB so it always fits v7x's 64 MiB
    # physical VMEM (v5e/v6e have 128 MiB and are unaffected by the cap).
    est = _est_vmem_bytes(Bt, N, C, Hm, H)
    vmem_limit = int(min(48 * 2**20, max(32 * 2**20, est + 8 * 2**20)))

    kernel = functools.partial(transformer_layer_kernel, num_heads=num_heads)

    return pl.pallas_call(
        kernel,
        out_shape=jax.ShapeDtypeStruct((B, N, C), jnp.float32),
        grid_spec=pltpu.PrefetchScalarGridSpec(
            num_scalar_prefetch=0,
            grid=(B // Bt,),
            in_specs=in_specs,
            out_specs=out_specs,
        ),
        input_output_aliases={0: 0},   # update activations in place
        compiler_params=pltpu.CompilerParams(
            dimension_semantics=("parallel",),
            vmem_limit_bytes=vmem_limit,
        ),
    )(x, *operands)


def init_layer_params(key, dim_self, num_heads, mlp_ratio):
    """PyTorch-equivalent f32 params; linear weights stored as [in, out]."""
    Hm = int(dim_self * mlp_ratio)
    ks = jax.random.split(key, 5)
    scale = 0.02
    return {
        "ln1_w": jnp.ones((1, dim_self), jnp.float32),
        "ln1_b": jnp.zeros((1, dim_self), jnp.float32),
        "wq": scale * jax.random.normal(ks[0], (dim_self, dim_self), jnp.float32),
        "wkv": scale * jax.random.normal(ks[1], (dim_self, 2 * dim_self), jnp.float32),
        "wproj": scale * jax.random.normal(ks[2], (dim_self, dim_self), jnp.float32),
        "bproj": jnp.zeros((1, dim_self), jnp.float32),
        "ln2_w": jnp.ones((1, dim_self), jnp.float32),
        "ln2_b": jnp.zeros((1, dim_self), jnp.float32),
        "w1": scale * jax.random.normal(ks[3], (dim_self, Hm), jnp.float32),
        "b1": jnp.zeros((1, Hm), jnp.float32),
        "w2": scale * jax.random.normal(ks[4], (Hm, dim_self), jnp.float32),
        "b2": jnp.zeros((1, dim_self), jnp.float32),
    }


def prepare_layer_params(p, num_heads):
    """Convert f32 [in,out] params into kernel-ready bf16 fused layout.

    - Q/K/V weights fused column-wise into a single (C, 3C) slab so the kernel
      runs one full-width, full-depth QKV matmul.
    - Attention scale D**-0.5 folded into the Q columns (one-time weight scale,
      removes the per-step (N,N) multiply).
    - Column / row ordering follows PyTorch reshape semantics:
        to_queries / keys / values output column h*D+d -> head h, dim d;
        project input row h*D+d -> head h, dim d.
    """
    C = p["wq"].shape[0]
    D = C // num_heads
    scale = D ** (-0.5)
    wq = p["wq"] * scale
    wk = p["wkv"][:, :C]
    wv = p["wkv"][:, C:]
    wqkv = jnp.concatenate([wq, wk, wv], axis=1).astype(jnp.bfloat16)  # (C, 3C)
    return {
        "ln1_w": p["ln1_w"], "ln1_b": p["ln1_b"],
        "wqkv": wqkv,
        "wo": p["wproj"].astype(jnp.bfloat16),
        "bproj": p["bproj"],
        "ln2_w": p["ln2_w"], "ln2_b": p["ln2_b"],
        "w1": p["w1"].astype(jnp.bfloat16), "b1": p["b1"],
        "w2": p["w2"].astype(jnp.bfloat16), "b2": p["b2"],
    }


def transformer_forward(x, kernel_layer_params, num_heads):
    # enc_dec=False, y=None, mask=None path of Transformer.forward
    # TODO(synk): cross-attention (enc_dec / y) and attention-mask paths are
    # not implemented; dropout is identity (p=0 / eval mode).
    # TODO(synk): P10 cross-pallas_call prefetch of the next layer's weights.
    for kp in kernel_layer_params:
        x = apply_layer(x, kp, num_heads)
    return x


if __name__ == "__main__":
    # small shapes consistent with the module's forward
    batch, seq, dim_self = 2, 8, 32
    num_heads, num_layers, mlp_ratio = 4, 2, 2.0

    key = jax.random.PRNGKey(0)
    key_x, *layer_keys = jax.random.split(key, 1 + num_layers)

    x = jax.random.normal(key_x, (batch, seq, dim_self), jnp.float32)
    layer_params = [
        prepare_layer_params(
            init_layer_params(k, dim_self, num_heads, mlp_ratio), num_heads)
        for k in layer_keys
    ]

    fwd = jax.jit(functools.partial(transformer_forward, num_heads=num_heads))
    out = jax.block_until_ready(fwd(x, layer_params))
    assert out.shape == (batch, seq, dim_self)
    print("KERNEL_OK")
</pallas_src>

<mosaic_0001>
module attributes {stable_mosaic.version = 11 : i64} {
  func.func @transformer_layer_kernel(%arg0: i32, %arg1: memref<1x8x32xf32, #tpu.memory_space<vmem>>, %arg2: memref<1x32xf32, #tpu.memory_space<vmem>>, %arg3: memref<1x32xf32, #tpu.memory_space<vmem>>, %arg4: memref<32x96xbf16, #tpu.memory_space<vmem>>, %arg5: memref<32x32xbf16, #tpu.memory_space<vmem>>, %arg6: memref<1x32xf32, #tpu.memory_space<vmem>>, %arg7: memref<1x32xf32, #tpu.memory_space<vmem>>, %arg8: memref<1x32xf32, #tpu.memory_space<vmem>>, %arg9: memref<32x64xbf16, #tpu.memory_space<vmem>>, %arg10: memref<1x64xf32, #tpu.memory_space<vmem>>, %arg11: memref<64x32xbf16, #tpu.memory_space<vmem>>, %arg12: memref<1x32xf32, #tpu.memory_space<vmem>>, %arg13: memref<1x8x32xf32, #tpu.memory_space<vmem>>) attributes {dimension_semantics = [#tpu.dimension_semantics<parallel>], iteration_bounds = array<i64: 2>, scalar_prefetch = 0 : i64, scratch_operands = 0 : i64, tpu.core_type = #tpu.core_type<tc>, window_params = [{transform_indices = @transform_0, window_bounds = array<i64: 1, 8, 32>}, {pipeline_mode = #tpu.pipeline_mode<synchronous>, transform_indices = @transform_1, window_bounds = array<i64: 1, 32>}, {pipeline_mode = #tpu.pipeline_mode<synchronous>, transform_indices = @transform_2, window_bounds = array<i64: 1, 32>}, {pipeline_mode = #tpu.pipeline_mode<synchronous>, transform_indices = @transform_3, window_bounds = array<i64: 32, 96>}, {pipeline_mode = #tpu.pipeline_mode<synchronous>, transform_indices = @transform_4, window_bounds = array<i64: 32, 32>}, {pipeline_mode = #tpu.pipeline_mode<synchronous>, transform_indices = @transform_5, window_bounds = array<i64: 1, 32>}, {pipeline_mode = #tpu.pipeline_mode<synchronous>, transform_indices = @transform_6, window_bounds = array<i64: 1, 32>}, {pipeline_mode = #tpu.pipeline_mode<synchronous>, transform_indices = @transform_7, window_bounds = array<i64: 1, 32>}, {pipeline_mode = #tpu.pipeline_mode<synchronous>, transform_indices = @transform_8, window_bounds = array<i64: 32, 64>}, {pipeline_mode = #tpu.pipeline_mode<synchronous>, transform_indices = @transform_9, window_bounds = array<i64: 1, 64>}, {pipeline_mode = #tpu.pipeline_mode<synchronous>, transform_indices = @transform_10, window_bounds = array<i64: 64, 32>}, {pipeline_mode = #tpu.pipeline_mode<synchronous>, transform_indices = @transform_11, window_bounds = array<i64: 1, 32>}, {transform_indices = @transform_12, window_bounds = array<i64: 1, 8, 32>}]} {
    %c0 = arith.constant 0 : index
    %c0_0 = arith.constant 0 : index
    %c0_1 = arith.constant 0 : index
    %0 = vector.load %arg1[%c0, %c0_0, %c0_1] : memref<1x8x32xf32, #tpu.memory_space<vmem>>, vector<1x8x32xf32>
    %1 = vector.shape_cast %0 : vector<1x8x32xf32> to vector<8x32xf32>
    %c0_2 = arith.constant 0 : index
    %c0_3 = arith.constant 0 : index
    %2 = vector.load %arg2[%c0_2, %c0_3] : memref<1x32xf32, #tpu.memory_space<vmem>>, vector<1x32xf32>
    %c0_4 = arith.constant 0 : index
    %c0_5 = arith.constant 0 : index
    %3 = vector.load %arg3[%c0_4, %c0_5] : memref<1x32xf32, #tpu.memory_space<vmem>>, vector<1x32xf32>
    %cst = arith.constant dense<0.000000e+00> : vector<8xf32>
    %4 = vector.multi_reduction <add>, %1, %cst [1] : vector<8x32xf32> to vector<8xf32>
    %5 = vector.shape_cast %4 : vector<8xf32> to vector<8x1xf32>
    %cst_6 = arith.constant 3.200000e+01 : f32
    %6 = vector.broadcast %cst_6 : f32 to vector<8x1xf32>
    %7 = arith.divf %5, %6 : vector<8x1xf32>
    %8 = vector.broadcast %7 : vector<8x1xf32> to vector<8x32xf32>
    %9 = arith.subf %1, %8 : vector<8x32xf32>
    %10 = arith.mulf %9, %9 : vector<8x32xf32>
    %cst_7 = arith.constant dense<0.000000e+00> : vector<8xf32>
    %11 = vector.multi_reduction <add>, %10, %cst_7 [1] : vector<8x32xf32> to vector<8xf32>
    %12 = vector.shape_cast %11 : vector<8xf32> to vector<8x1xf32>
    %cst_8 = arith.constant 3.200000e+01 : f32
    %13 = vector.broadcast %cst_8 : f32 to vector<8x1xf32>
    %14 = arith.divf %12, %13 : vector<8x1xf32>
    %cst_9 = arith.constant 9.99999974E-6 : f32
    %15 = vector.broadcast %cst_9 : f32 to vector<8x1xf32>
    %16 = arith.addf %14, %15 : vector<8x1xf32>
    %17 = math.rsqrt %16 : vector<8x1xf32>
    %18 = vector.broadcast %17 : vector<8x1xf32> to vector<8x32xf32>
    %19 = arith.mulf %9, %18 : vector<8x32xf32>
    %20 = vector.broadcast %2 : vector<1x32xf32> to vector<8x32xf32>
    %21 = arith.mulf %19, %20 : vector<8x32xf32>
    %22 = vector.broadcast %3 : vector<1x32xf32> to vector<8x32xf32>
    %23 = arith.addf %21, %22 : vector<8x32xf32>
    %24 = arith.truncf %23 : vector<8x32xf32> to vector<8x32xbf16>
    %c0_10 = arith.constant 0 : index
    %c0_11 = arith.constant 0 : index
    %25 = vector.load %arg4[%c0_10, %c0_11] : memref<32x96xbf16, #tpu.memory_space<vmem>>, vector<32x96xbf16>
    %cst_12 = arith.constant dense<0.000000e+00> : vector<8x96xf32>
    %26 = tpu.matmul %24, %25, %cst_12 {dimension_numbers = #tpu.dot_dimension_numbers<[1], [0], [0], [1], [0, 0, 1, 1], [], []>} : vector<8x32xbf16>, vector<32x96xbf16>, vector<8x96xf32> -> vector<8x96xf32>
    %27 = vector.extract_strided_slice %26 {offsets = [0, 0], sizes = [8, 8], strides = [1, 1]} : vector<8x96xf32> to vector<8x8xf32>
    %28 = vector.shape_cast %27 : vector<8x8xf32> to vector<1x8x8xf32>
    %29 = arith.truncf %28 : vector<1x8x8xf32> to vector<1x8x8xbf16>
    %30 = vector.extract_strided_slice %26 {offsets = [0, 32], sizes = [8, 8], strides = [1, 1]} : vector<8x96xf32> to vector<8x8xf32>
    %31 = vector.shape_cast %30 : vector<8x8xf32> to vector<1x8x8xf32>
    %32 = arith.truncf %31 : vector<1x8x8xf32> to vector<1x8x8xbf16>
    %33 = vector.extract_strided_slice %26 {offsets = [0, 64], sizes = [8, 8], strides = [1, 1]} : vector<8x96xf32> to vector<8x8xf32>
    %34 = vector.shape_cast %33 : vector<8x8xf32> to vector<1x8x8xf32>
    %35 = arith.truncf %34 : vector<1x8x8xf32> to vector<1x8x8xbf16>
    "tpu.trace_start"() <{level = 10 : i32, message = "bnd,bmd->bnm"}> : () -> ()
    %cst_13 = arith.constant dense<0.000000e+00> : vector<1x8x8xf32>
    %36 = tpu.matmul %29, %32, %cst_13 {dimension_numbers = #tpu.dot_dimension_numbers<[2], [2], [1], [1], [0, 0, 0, 1, 1, 1], [0], [0]>} : vector<1x8x8xbf16>, vector<1x8x8xbf16>, vector<1x8x8xf32> -> vector<1x8x8xf32>
    "tpu.trace_stop"() : () -> ()
    %cst_14 = arith.constant dense<0xFF800000> : vector<1x8xf32>
    %37 = vector.multi_reduction <maximumf>, %36, %cst_14 [2] : vector<1x8x8xf32> to vector<1x8xf32>
    %38 = vector.shape_cast %37 : vector<1x8xf32> to vector<1x8x1xf32>
    %39 = vector.broadcast %38 : vector<1x8x1xf32> to vector<1x8x8xf32>
    %40 = arith.subf %36, %39 : vector<1x8x8xf32>
    %41 = math.exp %40 : vector<1x8x8xf32>
    %cst_15 = arith.constant dense<0.000000e+00> : vector<1x8xf32>
    %42 = vector.multi_reduction <add>, %41, %cst_15 [2] : vector<1x8x8xf32> to vector<1x8xf32>
    %43 = vector.shape_cast %42 : vector<1x8xf32> to vector<1x8x1xf32>
    %44 = tpu.reciprocal %43 {approx = true} : vector<1x8x1xf32> -> vector<1x8x1xf32>
    %45 = vector.broadcast %44 : vector<1x8x1xf32> to vector<1x8x8xf32>
    %46 = arith.mulf %41, %45 : vector<1x8x8xf32>
    %47 = arith.truncf %46 : vector<1x8x8xf32> to vector<1x8x8xbf16>
    "tpu.trace_start"() <{level = 10 : i32, message = "bnm,bmd->bnd"}> : () -> ()
    %cst_16 = arith.constant dense<0.000000e+00> : vector<1x8x8xf32>
    %48 = tpu.matmul %47, %35, %cst_16 {dimension_numbers = #tpu.dot_dimension_numbers<[2], [1], [1], [2], [0, 0, 0, 1, 1, 2], [0], [0]>} : vector<1x8x8xbf16>, vector<1x8x8xbf16>, vector<1x8x8xf32> -> vector<1x8x8xf32>
    "tpu.trace_stop"() : () -> ()
    %49 = vector.shape_cast %48 : vector<1x8x8xf32> to vector<8x8xf32>
    %50 = vector.extract_strided_slice %26 {offsets = [0, 8], sizes = [8, 8], strides = [1, 1]} : vector<8x96xf32> to vector<8x8xf32>
    %51 = vector.shape_cast %50 : vector<8x8xf32> to vector<1x8x8xf32>
    %52 = arith.truncf %51 : vector<1x8x8xf32> to vector<1x8x8xbf16>
    %53 = vector.extract_strided_slice %26 {offsets = [0, 40], sizes = [8, 8], strides = [1, 1]} : vector<8x96xf32> to vector<8x8xf32>
    %54 = vector.shape_cast %53 : vector<8x8xf32> to vector<1x8x8xf32>
    %55 = arith.truncf %54 : vector<1x8x8xf32> to vector<1x8x8xbf16>
    %56 = vector.extract_strided_slice %26 {offsets = [0, 72], sizes = [8, 8], strides = [1, 1]} : vector<8x96xf32> to vector<8x8xf32>
    %57 = vector.shape_cast %56 : vector<8x8xf32> to vector<1x8x8xf32>
    %58 = arith.truncf %57 : vector<1x8x8xf32> to vector<1x8x8xbf16>
    "tpu.trace_start"() <{level = 10 : i32, message = "bnd,bmd->bnm"}> : () -> ()
    %cst_17 = arith.constant dense<0.000000e+00> : vector<1x8x8xf32>
    %59 = tpu.matmul %52, %55, %cst_17 {dimension_numbers = #tpu.dot_dimension_numbers<[2], [2], [1], [1], [0, 0, 0, 1, 1, 1], [0], [0]>} : vector<1x8x8xbf16>, vector<1x8x8xbf16>, vector<1x8x8xf32> -> vector<1x8x8xf32>
    "tpu.trace_stop"() : () -> ()
    %cst_18 = arith.constant dense<0xFF800000> : vector<1x8xf32>
    %60 = vector.multi_reduction <maximumf>, %59, %cst_18 [2] : vector<1x8x8xf32> to vector<1x8xf32>
    %61 = vector.shape_cast %60 : vector<1x8xf32> to vector<1x8x1xf32>
    %62 = vector.broadcast %61 : vector<1x8x1xf32> to vector<1x8x8xf32>
    %63 = arith.subf %59, %62 : vector<1x8x8xf32>
    %64 = math.exp %63 : vector<1x8x8xf32>
    %cst_19 = arith.constant dense<0.000000e+00> : vector<1x8xf32>
    %65 = vector.multi_reduction <add>, %64, %cst_19 [2] : vector<1x8x8xf32> to vector<1x8xf32>
    %66 = vector.shape_cast %65 : vector<1x8xf32> to vector<1x8x1xf32>
    %67 = tpu.reciprocal %66 {approx = true} : vector<1x8x1xf32> -> vector<1x8x1xf32>
    %68 = vector.broadcast %67 : vector<1x8x1xf32> to vector<1x8x8xf32>
    %69 = arith.mulf %64, %68 : vector<1x8x8xf32>
    %70 = arith.truncf %69 : vector<1x8x8xf32> to vector<1x8x8xbf16>
    "tpu.trace_start"() <{level = 10 : i32, message = "bnm,bmd->bnd"}> : () -> ()
    %cst_20 = arith.constant dense<0.000000e+00> : vector<1x8x8xf32>
    %71 = tpu.matmul %70, %58, %cst_20 {dimension_numbers = #tpu.dot_dimension_numbers<[2], [1], [1], [2], [0, 0, 0, 1, 1, 2], [0], [0]>} : vector<1x8x8xbf16>, vector<1x8x8xbf16>, vector<1x8x8xf32> -> vector<1x8x8xf32>
    "tpu.trace_stop"() : () -> ()
    %72 = vector.shape_cast %71 : vector<1x8x8xf32> to vector<8x8xf32>
    %73 = vector.extract_strided_slice %26 {offsets = [0, 16], sizes = [8, 8], strides = [1, 1]} : vector<8x96xf32> to vector<8x8xf32>
    %74 = vector.shape_cast %73 : vector<8x8xf32> to vector<1x8x8xf32>
    %75 = arith.truncf %74 : vector<1x8x8xf32> to vector<1x8x8xbf16>
    %76 = vector.extract_strided_slice %26 {offsets = [0, 48], sizes = [8, 8], strides = [1, 1]} : vector<8x96xf32> to vector<8x8xf32>
    %77 = vector.shape_cast %76 : vector<8x8xf32> to vector<1x8x8xf32>
    %78 = arith.truncf %77 : vector<1x8x8xf32> to vector<1x8x8xbf16>
    %79 = vector.extract_strided_slice %26 {offsets = [0, 80], sizes = [8, 8], strides = [1, 1]} : vector<8x96xf32> to vector<8x8xf32>
    %80 = vector.shape_cast %79 : vector<8x8xf32> to vector<1x8x8xf32>
    %81 = arith.truncf %80 : vector<1x8x8xf32> to vector<1x8x8xbf16>
    "tpu.trace_start"() <{level = 10 : i32, message = "bnd,bmd->bnm"}> : () -> ()
    %cst_21 = arith.constant dense<0.000000e+00> : vector<1x8x8xf32>
    %82 = tpu.matmul %75, %78, %cst_21 {dimension_numbers = #tpu.dot_dimension_numbers<[2], [2], [1], [1], [0, 0, 0, 1, 1, 1], [0], [0]>} : vector<1x8x8xbf16>, vector<1x8x8xbf16>, vector<1x8x8xf32> -> vector<1x8x8xf32>
    "tpu.trace_stop"() : () -> ()
    %cst_22 = arith.constant dense<0xFF800000> : vector<1x8xf32>
    %83 = vector.multi_reduction <maximumf>, %82, %cst_22 [2] : vector<1x8x8xf32> to vector<1x8xf32>
    %84 = vector.shape_cast %83 : vector<1x8xf32> to vector<1x8x1xf32>
    %85 = vector.broadcast %84 : vector<1x8x1xf32> to vector<1x8x8xf32>
    %86 = arith.subf %82, %85 : vector<1x8x8xf32>
    %87 = math.exp %86 : vector<1x8x8xf32>
    %cst_23 = arith.constant dense<0.000000e+00> : vector<1x8xf32>
    %88 = vector.multi_reduction <add>, %87, %cst_23 [2] : vector<1x8x8xf32> to vector<1x8xf32>
    %89 = vector.shape_cast %88 : vector<1x8xf32> to vector<1x8x1xf32>
    %90 = tpu.reciprocal %89 {approx = true} : vector<1x8x1xf32> -> vector<1x8x1xf32>
    %91 = vector.broadcast %90 : vector<1x8x1xf32> to vector<1x8x8xf32>
    %92 = arith.mulf %87, %91 : vector<1x8x8xf32>
    %93 = arith.truncf %92 : vector<1x8x8xf32> to vector<1x8x8xbf16>
    "tpu.trace_start"() <{level = 10 : i32, message = "bnm,bmd->bnd"}> : () -> ()
    %cst_24 = arith.constant dense<0.000000e+00> : vector<1x8x8xf32>
    %94 = tpu.matmul %93, %81, %cst_24 {dimension_numbers = #tpu.dot_dimension_numbers<[2], [1], [1], [2], [0, 0, 0, 1, 1, 2], [0], [0]>} : vector<1x8x8xbf16>, vector<1x8x8xbf16>, vector<1x8x8xf32> -> vector<1x8x8xf32>
    "tpu.trace_stop"() : () -> ()
    %95 = vector.shape_cast %94 : vector<1x8x8xf32> to vector<8x8xf32>
    %96 = vector.extract_strided_slice %26 {offsets = [0, 24], sizes = [8, 8], strides = [1, 1]} : vector<8x96xf32> to vector<8x8xf32>
    %97 = vector.shape_cast %96 : vector<8x8xf32> to vector<1x8x8xf32>
    %98 = arith.truncf %97 : vector<1x8x8xf32> to vector<1x8x8xbf16>
    %99 = vector.extract_strided_slice %26 {offsets = [0, 56], sizes = [8, 8], strides = [1, 1]} : vector<8x96xf32> to vector<8x8xf32>
    %100 = vector.shape_cast %99 : vector<8x8xf32> to vector<1x8x8xf32>
    %101 = arith.truncf %100 : vector<1x8x8xf32> to vector<1x8x8xbf16>
    %102 = vector.extract_strided_slice %26 {offsets = [0, 88], sizes = [8, 8], strides = [1, 1]} : vector<8x96xf32> to vector<8x8xf32>
    %103 = vector.shape_cast %102 : vector<8x8xf32> to vector<1x8x8xf32>
    %104 = arith.truncf %103 : vector<1x8x8xf32> to vector<1x8x8xbf16>
    "tpu.trace_start"() <{level = 10 : i32, message = "bnd,bmd->bnm"}> : () -> ()
    %cst_25 = arith.constant dense<0.000000e+00> : vector<1x8x8xf32>
    %105 = tpu.matmul %98, %101, %cst_25 {dimension_numbers = #tpu.dot_dimension_numbers<[2], [2], [1], [1], [0, 0, 0, 1, 1, 1], [0], [0]>} : vector<1x8x8xbf16>, vector<1x8x8xbf16>, vector<1x8x8xf32> -> vector<1x8x8xf32>
    "tpu.trace_stop"() : () -> ()
    %cst_26 = arith.constant dense<0xFF800000> : vector<1x8xf32>
    %106 = vector.multi_reduction <maximumf>, %105, %cst_26 [2] : vector<1x8x8xf32> to vector<1x8xf32>
    %107 = vector.shape_cast %106 : vector<1x8xf32> to vector<1x8x1xf32>
    %108 = vector.broadcast %107 : vector<1x8x1xf32> to vector<1x8x8xf32>
    %109 = arith.subf %105, %108 : vector<1x8x8xf32>
    %110 = math.exp %109 : vector<1x8x8xf32>
    %cst_27 = arith.constant dense<0.000000e+00> : vector<1x8xf32>
    %111 = vector.multi_reduction <add>, %110, %cst_27 [2] : vector<1x8x8xf32> to vector<1x8xf32>
    %112 = vector.shape_cast %111 : vector<1x8xf32> to vector<1x8x1xf32>
    %113 = tpu.reciprocal %112 {approx = true} : vector<1x8x1xf32> -> vector<1x8x1xf32>
    %114 = vector.broadcast %113 : vector<1x8x1xf32> to vector<1x8x8xf32>
    %115 = arith.mulf %110, %114 : vector<1x8x8xf32>
    %116 = arith.truncf %115 : vector<1x8x8xf32> to vector<1x8x8xbf16>
    "tpu.trace_start"() <{level = 10 : i32, message = "bnm,bmd->bnd"}> : () -> ()
    %cst_28 = arith.constant dense<0.000000e+00> : vector<1x8x8xf32>
    %117 = tpu.matmul %116, %104, %cst_28 {dimension_numbers = #tpu.dot_dimension_numbers<[2], [1], [1], [2], [0, 0, 0, 1, 1, 2], [0], [0]>} : vector<1x8x8xbf16>, vector<1x8x8xbf16>, vector<1x8x8xf32> -> vector<1x8x8xf32>
    "tpu.trace_stop"() : () -> ()
    %118 = vector.shape_cast %117 : vector<1x8x8xf32> to vector<8x8xf32>
    %119 = tpu.concatenate %49, %72, %95, %118 in 1 : vector<8x8xf32>, vector<8x8xf32>, vector<8x8xf32>, vector<8x8xf32> -> vector<8x32xf32>
    %120 = arith.truncf %119 : vector<8x32xf32> to vector<8x32xbf16>
    %c0_29 = arith.constant 0 : index
    %c0_30 = arith.constant 0 : index
    %121 = vector.load %arg5[%c0_29, %c0_30] : memref<32x32xbf16, #tpu.memory_space<vmem>>, vector<32x32xbf16>
    %cst_31 = arith.constant dense<0.000000e+00> : vector<8x32xf32>
    %122 = tpu.matmul %120, %121, %cst_31 {dimension_numbers = #tpu.dot_dimension_numbers<[1], [0], [0], [1], [0, 0, 1, 1], [], []>} : vector<8x32xbf16>, vector<32x32xbf16>, vector<8x32xf32> -> vector<8x32xf32>
    %c0_32 = arith.constant 0 : index
    %c0_33 = arith.constant 0 : index
    %123 = vector.load %arg6[%c0_32, %c0_33] : memref<1x32xf32, #tpu.memory_space<vmem>>, vector<1x32xf32>
    %124 = vector.broadcast %123 : vector<1x32xf32> to vector<8x32xf32>
    %125 = arith.addf %122, %124 : vector<8x32xf32>
    %126 = arith.addf %1, %125 : vector<8x32xf32>
    %c0_34 = arith.constant 0 : index
    %c0_35 = arith.constant 0 : index
    %127 = vector.load %arg7[%c0_34, %c0_35] : memref<1x32xf32, #tpu.memory_space<vmem>>, vector<1x32xf32>
    %c0_36 = arith.constant 0 : index
    %c0_37 = arith.constant 0 : index
    %128 = vector.load %arg8[%c0_36, %c0_37] : memref<1x32xf32, #tpu.memory_space<vmem>>, vector<1x32xf32>
    %cst_38 = arith.constant dense<0.000000e+00> : vector<8xf32>
    %129 = vector.multi_reduction <add>, %126, %cst_38 [1] : vector<8x32xf32> to vector<8xf32>
    %130 = vector.shape_cast %129 : vector<8xf32> to vector<8x1xf32>
    %cst_39 = arith.constant 3.200000e+01 : f32
    %131 = vector.broadcast %cst_39 : f32 to vector<8x1xf32>
    %132 = arith.divf %130, %131 : vector<8x1xf32>
    %133 = vector.broadcast %132 : vector<8x1xf32> to vector<8x32xf32>
    %134 = arith.subf %126, %133 : vector<8x32xf32>
    %135 = arith.mulf %134, %134 : vector<8x32xf32>
    %cst_40 = arith.constant dense<0.000000e+00> : vector<8xf32>
    %136 = vector.multi_reduction <add>, %135, %cst_40 [1] : vector<8x32xf32> to vector<8xf32>
    %137 = vector.shape_cast %136 : vector<8xf32> to vector<8x1xf32>
    %cst_41 = arith.constant 3.200000e+01 : f32
    %138 = vector.broadcast %cst_41 : f32 to vector<8x1xf32>
    %139 = arith.divf %137, %138 : vector<8x1xf32>
    %cst_42 = arith.constant 9.99999974E-6 : f32
    %140 = vector.broadcast %cst_42 : f32 to vector<8x1xf32>
    %141 = arith.addf %139, %140 : vector<8x1xf32>
    %142 = math.rsqrt %141 : vector<8x1xf32>
    %143 = vector.broadcast %142 : vector<8x1xf32> to vector<8x32xf32>
    %144 = arith.mulf %134, %143 : vector<8x32xf32>
    %145 = vector.broadcast %127 : vector<1x32xf32> to vector<8x32xf32>
    %146 = arith.mulf %144, %145 : vector<8x32xf32>
    %147 = vector.broadcast %128 : vector<1x32xf32> to vector<8x32xf32>
    %148 = arith.addf %146, %147 : vector<8x32xf32>
    %149 = arith.truncf %148 : vector<8x32xf32> to vector<8x32xbf16>
    %c0_43 = arith.constant 0 : index
    %c0_44 = arith.constant 0 : index
    %150 = vector.load %arg9[%c0_43, %c0_44] : memref<32x64xbf16, #tpu.memory_space<vmem>>, vector<32x64xbf16>
    %cst_45 = arith.constant dense<0.000000e+00> : vector<8x64xf32>
    %151 = tpu.matmul %149, %150, %cst_45 {dimension_numbers = #tpu.dot_dimension_numbers<[1], [0], [0], [1], [0, 0, 1, 1], [], []>} : vector<8x32xbf16>, vector<32x64xbf16>, vector<8x64xf32> -> vector<8x64xf32>
    %c0_46 = arith.constant 0 : index
    %c0_47 = arith.constant 0 : index
    %152 = vector.load %arg10[%c0_46, %c0_47] : memref<1x64xf32, #tpu.memory_space<vmem>>, vector<1x64xf32>
    %153 = vector.broadcast %152 : vector<1x64xf32> to vector<8x64xf32>
    %154 = arith.addf %151, %153 : vector<8x64xf32>
    %cst_48 = arith.constant 0.000000e+00 : f32
    %155 = vector.broadcast %cst_48 : f32 to vector<8x64xf32>
    %156 = arith.maximumf %154, %155 : vector<8x64xf32>
    %157 = arith.truncf %156 : vector<8x64xf32> to vector<8x64xbf16>
    %c0_49 = arith.constant 0 : index
    %c0_50 = arith.constant 0 : index
    %158 = vector.load %arg11[%c0_49, %c0_50] : memref<64x32xbf16, #tpu.memory_space<vmem>>, vector<64x32xbf16>
    %cst_51 = arith.constant dense<0.000000e+00> : vector<8x32xf32>
    %159 = tpu.matmul %157, %158, %cst_51 {dimension_numbers = #tpu.dot_dimension_numbers<[1], [0], [0], [1], [0, 0, 1, 1], [], []>} : vector<8x64xbf16>, vector<64x32xbf16>, vector<8x32xf32> -> vector<8x32xf32>
    %c0_52 = arith.constant 0 : index
    %c0_53 = arith.constant 0 : index
    %160 = vector.load %arg12[%c0_52, %c0_53] : memref<1x32xf32, #tpu.memory_space<vmem>>, vector<1x32xf32>
    %161 = vector.broadcast %160 : vector<1x32xf32> to vector<8x32xf32>
    %162 = arith.addf %159, %161 : vector<8x32xf32>
    %163 = arith.addf %126, %162 : vector<8x32xf32>
    %164 = vector.shape_cast %163 : vector<8x32xf32> to vector<1x8x32xf32>
    %c0_54 = arith.constant 0 : index
    %c0_55 = arith.constant 0 : index
    %c0_56 = arith.constant 0 : index
    %165 = vector.load %arg13[%c0_54, %c0_55, %c0_56] : memref<1x8x32xf32, #tpu.memory_space<vmem>>, vector<1x8x32xf32>
    tpu.vector_store %arg13[%c0_54, %c0_55, %c0_56], %164 {strides = array<i32>} : memref<1x8x32xf32, #tpu.memory_space<vmem>>, vector<1x8x32xf32>,
    return
  }
  func.func @transform_0(%arg0: i32) -> (i32, i32, i32) {
    %c0_i32 = arith.constant 0 : i32
    %c0_i32_0 = arith.constant 0 : i32
    %c0_i32_1 = arith.constant 0 : i32
    return %arg0, %c0_i32, %c0_i32_0 : i32, i32, i32
  }
  func.func @transform_1(%arg0: i32) -> (i32, i32) {
    %c0_i32 = arith.constant 0 : i32
    %c0_i32_0 = arith.constant 0 : i32
    %c0_i32_1 = arith.constant 0 : i32
    return %c0_i32, %c0_i32_0 : i32, i32
  }
  func.func @transform_2(%arg0: i32) -> (i32, i32) {
    %c0_i32 = arith.constant 0 : i32
    %c0_i32_0 = arith.constant 0 : i32
    %c0_i32_1 = arith.constant 0 : i32
    return %c0_i32, %c0_i32_0 : i32, i32
  }
  func.func @transform_3(%arg0: i32) -> (i32, i32) {
    %c0_i32 = arith.constant 0 : i32
    %c0_i32_0 = arith.constant 0 : i32
    %c0_i32_1 = arith.constant 0 : i32
    return %c0_i32, %c0_i32_0 : i32, i32
  }
  func.func @transform_4(%arg0: i32) -> (i32, i32) {
    %c0_i32 = arith.constant 0 : i32
    %c0_i32_0 = arith.constant 0 : i32
    %c0_i32_1 = arith.constant 0 : i32
    return %c0_i32, %c0_i32_0 : i32, i32
  }
  func.func @transform_5(%arg0: i32) -> (i32, i32) {
    %c0_i32 = arith.constant 0 : i32
    %c0_i32_0 = arith.constant 0 : i32
    %c0_i32_1 = arith.constant 0 : i32
    return %c0_i32, %c0_i32_0 : i32, i32
  }
  func.func @transform_6(%arg0: i32) -> (i32, i32) {
    %c0_i32 = arith.constant 0 : i32
    %c0_i32_0 = arith.constant 0 : i32
    %c0_i32_1 = arith.constant 0 : i32
    return %c0_i32, %c0_i32_0 : i32, i32
  }
  func.func @transform_7(%arg0: i32) -> (i32, i32) {
    %c0_i32 = arith.constant 0 : i32
    %c0_i32_0 = arith.constant 0 : i32
    %c0_i32_1 = arith.constant 0 : i32
    return %c0_i32, %c0_i32_0 : i32, i32
  }
  func.func @transform_8(%arg0: i32) -> (i32, i32) {
    %c0_i32 = arith.constant 0 : i32
    %c0_i32_0 = arith.constant 0 : i32
    %c0_i32_1 = arith.constant 0 : i32
    return %c0_i32, %c0_i32_0 : i32, i32
  }
  func.func @transform_9(%arg0: i32) -> (i32, i32) {
    %c0_i32 = arith.constant 0 : i32
    %c0_i32_0 = arith.constant 0 : i32
    %c0_i32_1 = arith.constant 0 : i32
    return %c0_i32, %c0_i32_0 : i32, i32
  }
  func.func @transform_10(%arg0: i32) -> (i32, i32) {
    %c0_i32 = arith.constant 0 : i32
    %c0_i32_0 = arith.constant 0 : i32
    %c0_i32_1 = arith.constant 0 : i32
    return %c0_i32, %c0_i32_0 : i32, i32
  }
  func.func @transform_11(%arg0: i32) -> (i32, i32) {
    %c0_i32 = arith.constant 0 : i32
    %c0_i32_0 = arith.constant 0 : i32
    %c0_i32_1 = arith.constant 0 : i32
    return %c0_i32, %c0_i32_0 : i32, i32
  }
  func.func @transform_12(%arg0: i32) -> (i32, i32, i32) {
    %c0_i32 = arith.constant 0 : i32
    %c0_i32_0 = arith.constant 0 : i32
    %c0_i32_1 = arith.constant 0 : i32
    return %arg0, %c0_i32, %c0_i32_0 : i32, i32, i32
  }
}

module attributes {stable_mosaic.version = 11 : i64} {
  func.func @transformer_layer_kernel(%arg0: i32, %arg1: memref<1x8x32xf32, #tpu.memory_space<vmem>>, %arg2: memref<1x32xf32, #tpu.memory_space<vmem>>, %arg3: memref<1x32xf32, #tpu.memory_space<vmem>>, %arg4: memref<32x96xbf16, #tpu.memory_space<vmem>>, %arg5: memref<32x32xbf16, #tpu.memory_space<vmem>>, %arg6: memref<1x32xf32, #tpu.memory_space<vmem>>, %arg7: memref<1x32xf32, #tpu.memory_space<vmem>>, %arg8: memref<1x32xf32, #tpu.memory_space<vmem>>, %arg9: memref<32x64xbf16, #tpu.memory_space<vmem>>, %arg10: memref<1x64xf32, #tpu.memory_space<vmem>>, %arg11: memref<64x32xbf16, #tpu.memory_space<vmem>>, %arg12: memref<1x32xf32, #tpu.memory_space<vmem>>, %arg13: memref<1x8x32xf32, #tpu.memory_space<vmem>>) attributes {dimension_semantics = [#tpu.dimension_semantics<parallel>], iteration_bounds = array<i64: 2>, scalar_prefetch = 0 : i64, scratch_operands = 0 : i64, tpu.core_type = #tpu.core_type<tc>, window_params = [{transform_indices = @transform_0, window_bounds = array<i64: 1, 8, 32>}, {pipeline_mode = #tpu.pipeline_mode<synchronous>, transform_indices = @transform_1, window_bounds = array<i64: 1, 32>}, {pipeline_mode = #tpu.pipeline_mode<synchronous>, transform_indices = @transform_2, window_bounds = array<i64: 1, 32>}, {pipeline_mode = #tpu.pipeline_mode<synchronous>, transform_indices = @transform_3, window_bounds = array<i64: 32, 96>}, {pipeline_mode = #tpu.pipeline_mode<synchronous>, transform_indices = @transform_4, window_bounds = array<i64: 32, 32>}, {pipeline_mode = #tpu.pipeline_mode<synchronous>, transform_indices = @transform_5, window_bounds = array<i64: 1, 32>}, {pipeline_mode = #tpu.pipeline_mode<synchronous>, transform_indices = @transform_6, window_bounds = array<i64: 1, 32>}, {pipeline_mode = #tpu.pipeline_mode<synchronous>, transform_indices = @transform_7, window_bounds = array<i64: 1, 32>}, {pipeline_mode = #tpu.pipeline_mode<synchronous>, transform_indices = @transform_8, window_bounds = array<i64: 32, 64>}, {pipeline_mode = #tpu.pipeline_mode<synchronous>, transform_indices = @transform_9, window_bounds = array<i64: 1, 64>}, {pipeline_mode = #tpu.pipeline_mode<synchronous>, transform_indices = @transform_10, window_bounds = array<i64: 64, 32>}, {pipeline_mode = #tpu.pipeline_mode<synchronous>, transform_indices = @transform_11, window_bounds = array<i64: 1, 32>}, {transform_indices = @transform_12, window_bounds = array<i64: 1, 8, 32>}]} {
    %c0 = arith.constant 0 : index
    %c0_0 = arith.constant 0 : index
    %c0_1 = arith.constant 0 : index
    %0 = vector.load %arg1[%c0, %c0_0, %c0_1] : memref<1x8x32xf32, #tpu.memory_space<vmem>>, vector<1x8x32xf32>
    %1 = vector.shape_cast %0 : vector<1x8x32xf32> to vector<8x32xf32>
    %c0_2 = arith.constant 0 : index
    %c0_3 = arith.constant 0 : index
    %2 = vector.load %arg2[%c0_2, %c0_3] : memref<1x32xf32, #tpu.memory_space<vmem>>, vector<1x32xf32>
    %c0_4 = arith.constant 0 : index
    %c0_5 = arith.constant 0 : index
    %3 = vector.load %arg3[%c0_4, %c0_5] : memref<1x32xf32, #tpu.memory_space<vmem>>, vector<1x32xf32>
    %cst = arith.constant dense<0.000000e+00> : vector<8xf32>
    %4 = vector.multi_reduction <add>, %1, %cst [1] : vector<8x32xf32> to vector<8xf32>
    %5 = vector.shape_cast %4 : vector<8xf32> to vector<8x1xf32>
    %cst_6 = arith.constant 3.200000e+01 : f32
    %6 = vector.broadcast %cst_6 : f32 to vector<8x1xf32>
    %7 = arith.divf %5, %6 : vector<8x1xf32>
    %8 = vector.broadcast %7 : vector<8x1xf32> to vector<8x32xf32>
    %9 = arith.subf %1, %8 : vector<8x32xf32>
    %10 = arith.mulf %9, %9 : vector<8x32xf32>
    %cst_7 = arith.constant dense<0.000000e+00> : vector<8xf32>
    %11 = vector.multi_reduction <add>, %10, %cst_7 [1] : vector<8x32xf32> to vector<8xf32>
    %12 = vector.shape_cast %11 : vector<8xf32> to vector<8x1xf32>
    %cst_8 = arith.constant 3.200000e+01 : f32
    %13 = vector.broadcast %cst_8 : f32 to vector<8x1xf32>
    %14 = arith.divf %12, %13 : vector<8x1xf32>
    %cst_9 = arith.constant 9.99999974E-6 : f32
    %15 = vector.broadcast %cst_9 : f32 to vector<8x1xf32>
    %16 = arith.addf %14, %15 : vector<8x1xf32>
    %17 = math.rsqrt %16 : vector<8x1xf32>
    %18 = vector.broadcast %17 : vector<8x1xf32> to vector<8x32xf32>
    %19 = arith.mulf %9, %18 : vector<8x32xf32>
    %20 = vector.broadcast %2 : vector<1x32xf32> to vector<8x32xf32>
    %21 = arith.mulf %19, %20 : vector<8x32xf32>
    %22 = vector.broadcast %3 : vector<1x32xf32> to vector<8x32xf32>
    %23 = arith.addf %21, %22 : vector<8x32xf32>
    %24 = arith.truncf %23 : vector<8x32xf32> to vector<8x32xbf16>
    %c0_10 = arith.constant 0 : index
    %c0_11 = arith.constant 0 : index
    %25 = vector.load %arg4[%c0_10, %c0_11] : memref<32x96xbf16, #tpu.memory_space<vmem>>, vector<32x96xbf16>
    %cst_12 = arith.constant dense<0.000000e+00> : vector<8x96xf32>
    %26 = tpu.matmul %24, %25, %cst_12 {dimension_numbers = #tpu.dot_dimension_numbers<[1], [0], [0], [1], [0, 0, 1, 1], [], []>} : vector<8x32xbf16>, vector<32x96xbf16>, vector<8x96xf32> -> vector<8x96xf32>
    %27 = vector.extract_strided_slice %26 {offsets = [0, 0], sizes = [8, 8], strides = [1, 1]} : vector<8x96xf32> to vector<8x8xf32>
    %28 = vector.shape_cast %27 : vector<8x8xf32> to vector<1x8x8xf32>
    %29 = arith.truncf %28 : vector<1x8x8xf32> to vector<1x8x8xbf16>
    %30 = vector.extract_strided_slice %26 {offsets = [0, 32], sizes = [8, 8], strides = [1, 1]} : vector<8x96xf32> to vector<8x8xf32>
    %31 = vector.shape_cast %30 : vector<8x8xf32> to vector<1x8x8xf32>
    %32 = arith.truncf %31 : vector<1x8x8xf32> to vector<1x8x8xbf16>
    %33 = vector.extract_strided_slice %26 {offsets = [0, 64], sizes = [8, 8], strides = [1, 1]} : vector<8x96xf32> to vector<8x8xf32>
    %34 = vector.shape_cast %33 : vector<8x8xf32> to vector<1x8x8xf32>
    %35 = arith.truncf %34 : vector<1x8x8xf32> to vector<1x8x8xbf16>
    "tpu.trace_start"() <{level = 10 : i32, message = "bnd,bmd->bnm"}> : () -> ()
    %cst_13 = arith.constant dense<0.000000e+00> : vector<1x8x8xf32>
    %36 = tpu.matmul %29, %32, %cst_13 {dimension_numbers = #tpu.dot_dimension_numbers<[2], [2], [1], [1], [0, 0, 0, 1, 1, 1], [0], [0]>} : vector<1x8x8xbf16>, vector<1x8x8xbf16>, vector<1x8x8xf32> -> vector<1x8x8xf32>
    "tpu.trace_stop"() : () -> ()
    %cst_14 = arith.constant dense<0xFF800000> : vector<1x8xf32>
    %37 = vector.multi_reduction <maximumf>, %36, %cst_14 [2] : vector<1x8x8xf32> to vector<1x8xf32>
    %38 = vector.shape_cast %37 : vector<1x8xf32> to vector<1x8x1xf32>
    %39 = vector.broadcast %38 : vector<1x8x1xf32> to vector<1x8x8xf32>
    %40 = arith.subf %36, %39 : vector<1x8x8xf32>
    %41 = math.exp %40 : vector<1x8x8xf32>
    %cst_15 = arith.constant dense<0.000000e+00> : vector<1x8xf32>
    %42 = vector.multi_reduction <add>, %41, %cst_15 [2] : vector<1x8x8xf32> to vector<1x8xf32>
    %43 = vector.shape_cast %42 : vector<1x8xf32> to vector<1x8x1xf32>
    %44 = tpu.reciprocal %43 {approx = true} : vector<1x8x1xf32> -> vector<1x8x1xf32>
    %45 = vector.broadcast %44 : vector<1x8x1xf32> to vector<1x8x8xf32>
    %46 = arith.mulf %41, %45 : vector<1x8x8xf32>
    %47 = arith.truncf %46 : vector<1x8x8xf32> to vector<1x8x8xbf16>
    "tpu.trace_start"() <{level = 10 : i32, message = "bnm,bmd->bnd"}> : () -> ()
    %cst_16 = arith.constant dense<0.000000e+00> : vector<1x8x8xf32>
    %48 = tpu.matmul %47, %35, %cst_16 {dimension_numbers = #tpu.dot_dimension_numbers<[2], [1], [1], [2], [0, 0, 0, 1, 1, 2], [0], [0]>} : vector<1x8x8xbf16>, vector<1x8x8xbf16>, vector<1x8x8xf32> -> vector<1x8x8xf32>
    "tpu.trace_stop"() : () -> ()
    %49 = vector.shape_cast %48 : vector<1x8x8xf32> to vector<8x8xf32>
    %50 = vector.extract_strided_slice %26 {offsets = [0, 8], sizes = [8, 8], strides = [1, 1]} : vector<8x96xf32> to vector<8x8xf32>
    %51 = vector.shape_cast %50 : vector<8x8xf32> to vector<1x8x8xf32>
    %52 = arith.truncf %51 : vector<1x8x8xf32> to vector<1x8x8xbf16>
    %53 = vector.extract_strided_slice %26 {offsets = [0, 40], sizes = [8, 8], strides = [1, 1]} : vector<8x96xf32> to vector<8x8xf32>
    %54 = vector.shape_cast %53 : vector<8x8xf32> to vector<1x8x8xf32>
    %55 = arith.truncf %54 : vector<1x8x8xf32> to vector<1x8x8xbf16>
    %56 = vector.extract_strided_slice %26 {offsets = [0, 72], sizes = [8, 8], strides = [1, 1]} : vector<8x96xf32> to vector<8x8xf32>
    %57 = vector.shape_cast %56 : vector<8x8xf32> to vector<1x8x8xf32>
    %58 = arith.truncf %57 : vector<1x8x8xf32> to vector<1x8x8xbf16>
    "tpu.trace_start"() <{level = 10 : i32, message = "bnd,bmd->bnm"}> : () -> ()
    %cst_17 = arith.constant dense<0.000000e+00> : vector<1x8x8xf32>
    %59 = tpu.matmul %52, %55, %cst_17 {dimension_numbers = #tpu.dot_dimension_numbers<[2], [2], [1], [1], [0, 0, 0, 1, 1, 1], [0], [0]>} : vector<1x8x8xbf16>, vector<1x8x8xbf16>, vector<1x8x8xf32> -> vector<1x8x8xf32>
    "tpu.trace_stop"() : () -> ()
    %cst_18 = arith.constant dense<0xFF800000> : vector<1x8xf32>
    %60 = vector.multi_reduction <maximumf>, %59, %cst_18 [2] : vector<1x8x8xf32> to vector<1x8xf32>
    %61 = vector.shape_cast %60 : vector<1x8xf32> to vector<1x8x1xf32>
    %62 = vector.broadcast %61 : vector<1x8x1xf32> to vector<1x8x8xf32>
    %63 = arith.subf %59, %62 : vector<1x8x8xf32>
    %64 = math.exp %63 : vector<1x8x8xf32>
    %cst_19 = arith.constant dense<0.000000e+00> : vector<1x8xf32>
    %65 = vector.multi_reduction <add>, %64, %cst_19 [2] : vector<1x8x8xf32> to vector<1x8xf32>
    %66 = vector.shape_cast %65 : vector<1x8xf32> to vector<1x8x1xf32>
    %67 = tpu.reciprocal %66 {approx = true} : vector<1x8x1xf32> -> vector<1x8x1xf32>
    %68 = vector.broadcast %67 : vector<1x8x1xf32> to vector<1x8x8xf32>
    %69 = arith.mulf %64, %68 : vector<1x8x8xf32>
    %70 = arith.truncf %69 : vector<1x8x8xf32> to vector<1x8x8xbf16>
    "tpu.trace_start"() <{level = 10 : i32, message = "bnm,bmd->bnd"}> : () -> ()
    %cst_20 = arith.constant dense<0.000000e+00> : vector<1x8x8xf32>
    %71 = tpu.matmul %70, %58, %cst_20 {dimension_numbers = #tpu.dot_dimension_numbers<[2], [1], [1], [2], [0, 0, 0, 1, 1, 2], [0], [0]>} : vector<1x8x8xbf16>, vector<1x8x8xbf16>, vector<1x8x8xf32> -> vector<1x8x8xf32>
    "tpu.trace_stop"() : () -> ()
    %72 = vector.shape_cast %71 : vector<1x8x8xf32> to vector<8x8xf32>
    %73 = vector.extract_strided_slice %26 {offsets = [0, 16], sizes = [8, 8], strides = [1, 1]} : vector<8x96xf32> to vector<8x8xf32>
    %74 = vector.shape_cast %73 : vector<8x8xf32> to vector<1x8x8xf32>
    %75 = arith.truncf %74 : vector<1x8x8xf32> to vector<1x8x8xbf16>
    %76 = vector.extract_strided_slice %26 {offsets = [0, 48], sizes = [8, 8], strides = [1, 1]} : vector<8x96xf32> to vector<8x8xf32>
    %77 = vector.shape_cast %76 : vector<8x8xf32> to vector<1x8x8xf32>
    %78 = arith.truncf %77 : vector<1x8x8xf32> to vector<1x8x8xbf16>
    %79 = vector.extract_strided_slice %26 {offsets = [0, 80], sizes = [8, 8], strides = [1, 1]} : vector<8x96xf32> to vector<8x8xf32>
    %80 = vector.shape_cast %79 : vector<8x8xf32> to vector<1x8x8xf32>
    %81 = arith.truncf %80 : vector<1x8x8xf32> to vector<1x8x8xbf16>
    "tpu.trace_start"() <{level = 10 : i32, message = "bnd,bmd->bnm"}> : () -> ()
    %cst_21 = arith.constant dense<0.000000e+00> : vector<1x8x8xf32>
    %82 = tpu.matmul %75, %78, %cst_21 {dimension_numbers = #tpu.dot_dimension_numbers<[2], [2], [1], [1], [0, 0, 0, 1, 1, 1], [0], [0]>} : vector<1x8x8xbf16>, vector<1x8x8xbf16>, vector<1x8x8xf32> -> vector<1x8x8xf32>
    "tpu.trace_stop"() : () -> ()
    %cst_22 = arith.constant dense<0xFF800000> : vector<1x8xf32>
    %83 = vector.multi_reduction <maximumf>, %82, %cst_22 [2] : vector<1x8x8xf32> to vector<1x8xf32>
    %84 = vector.shape_cast %83 : vector<1x8xf32> to vector<1x8x1xf32>
    %85 = vector.broadcast %84 : vector<1x8x1xf32> to vector<1x8x8xf32>
    %86 = arith.subf %82, %85 : vector<1x8x8xf32>
    %87 = math.exp %86 : vector<1x8x8xf32>
    %cst_23 = arith.constant dense<0.000000e+00> : vector<1x8xf32>
    %88 = vector.multi_reduction <add>, %87, %cst_23 [2] : vector<1x8x8xf32> to vector<1x8xf32>
    %89 = vector.shape_cast %88 : vector<1x8xf32> to vector<1x8x1xf32>
    %90 = tpu.reciprocal %89 {approx = true} : vector<1x8x1xf32> -> vector<1x8x1xf32>
    %91 = vector.broadcast %90 : vector<1x8x1xf32> to vector<1x8x8xf32>
    %92 = arith.mulf %87, %91 : vector<1x8x8xf32>
    %93 = arith.truncf %92 : vector<1x8x8xf32> to vector<1x8x8xbf16>
    "tpu.trace_start"() <{level = 10 : i32, message = "bnm,bmd->bnd"}> : () -> ()
    %cst_24 = arith.constant dense<0.000000e+00> : vector<1x8x8xf32>
    %94 = tpu.matmul %93, %81, %cst_24 {dimension_numbers = #tpu.dot_dimension_numbers<[2], [1], [1], [2], [0, 0, 0, 1, 1, 2], [0], [0]>} : vector<1x8x8xbf16>, vector<1x8x8xbf16>, vector<1x8x8xf32> -> vector<1x8x8xf32>
    "tpu.trace_stop"() : () -> ()
    %95 = vector.shape_cast %94 : vector<1x8x8xf32> to vector<8x8xf32>
    %96 = vector.extract_strided_slice %26 {offsets = [0, 24], sizes = [8, 8], strides = [1, 1]} : vector<8x96xf32> to vector<8x8xf32>
    %97 = vector.shape_cast %96 : vector<8x8xf32> to vector<1x8x8xf32>
    %98 = arith.truncf %97 : vector<1x8x8xf32> to vector<1x8x8xbf16>
    %99 = vector.extract_strided_slice %26 {offsets = [0, 56], sizes = [8, 8], strides = [1, 1]} : vector<8x96xf32> to vector<8x8xf32>
    %100 = vector.shape_cast %99 : vector<8x8xf32> to vector<1x8x8xf32>
    %101 = arith.truncf %100 : vector<1x8x8xf32> to vector<1x8x8xbf16>
    %102 = vector.extract_strided_slice %26 {offsets = [0, 88], sizes = [8, 8], strides = [1, 1]} : vector<8x96xf32> to vector<8x8xf32>
    %103 = vector.shape_cast %102 : vector<8x8xf32> to vector<1x8x8xf32>
    %104 = arith.truncf %103 : vector<1x8x8xf32> to vector<1x8x8xbf16>
    "tpu.trace_start"() <{level = 10 : i32, message = "bnd,bmd->bnm"}> : () -> ()
    %cst_25 = arith.constant dense<0.000000e+00> : vector<1x8x8xf32>
    %105 = tpu.matmul %98, %101, %cst_25 {dimension_numbers = #tpu.dot_dimension_numbers<[2], [2], [1], [1], [0, 0, 0, 1, 1, 1], [0], [0]>} : vector<1x8x8xbf16>, vector<1x8x8xbf16>, vector<1x8x8xf32> -> vector<1x8x8xf32>
    "tpu.trace_stop"() : () -> ()
    %cst_26 = arith.constant dense<0xFF800000> : vector<1x8xf32>
    %106 = vector.multi_reduction <maximumf>, %105, %cst_26 [2] : vector<1x8x8xf32> to vector<1x8xf32>
    %107 = vector.shape_cast %106 : vector<1x8xf32> to vector<1x8x1xf32>
    %108 = vector.broadcast %107 : vector<1x8x1xf32> to vector<1x8x8xf32>
    %109 = arith.subf %105, %108 : vector<1x8x8xf32>
    %110 = math.exp %109 : vector<1x8x8xf32>
    %cst_27 = arith.constant dense<0.000000e+00> : vector<1x8xf32>
    %111 = vector.multi_reduction <add>, %110, %cst_27 [2] : vector<1x8x8xf32> to vector<1x8xf32>
    %112 = vector.shape_cast %111 : vector<1x8xf32> to vector<1x8x1xf32>
    %113 = tpu.reciprocal %112 {approx = true} : vector<1x8x1xf32> -> vector<1x8x1xf32>
    %114 = vector.broadcast %113 : vector<1x8x1xf32> to vector<1x8x8xf32>
    %115 = arith.mulf %110, %114 : vector<1x8x8xf32>
    %116 = arith.truncf %115 : vector<1x8x8xf32> to vector<1x8x8xbf16>
    "tpu.trace_start"() <{level = 10 : i32, message = "bnm,bmd->bnd"}> : () -> ()
    %cst_28 = arith.constant dense<0.000000e+00> : vector<1x8x8xf32>
    %117 = tpu.matmul %116, %104, %cst_28 {dimension_numbers = #tpu.dot_dimension_numbers<[2], [1], [1], [2], [0, 0, 0, 1, 1, 2], [0], [0]>} : vector<1x8x8xbf16>, vector<1x8x8xbf16>, vector<1x8x8xf32> -> vector<1x8x8xf32>
    "tpu.trace_stop"() : () -> ()
    %118 = vector.shape_cast %117 : vector<1x8x8xf32> to vector<8x8xf32>
    %119 = tpu.concatenate %49, %72, %95, %118 in 1 : vector<8x8xf32>, vector<8x8xf32>, vector<8x8xf32>, vector<8x8xf32> -> vector<8x32xf32>
    %120 = arith.truncf %119 : vector<8x32xf32> to vector<8x32xbf16>
    %c0_29 = arith.constant 0 : index
    %c0_30 = arith.constant 0 : index
    %121 = vector.load %arg5[%c0_29, %c0_30] : memref<32x32xbf16, #tpu.memory_space<vmem>>, vector<32x32xbf16>
    %cst_31 = arith.constant dense<0.000000e+00> : vector<8x32xf32>
    %122 = tpu.matmul %120, %121, %cst_31 {dimension_numbers = #tpu.dot_dimension_numbers<[1], [0], [0], [1], [0, 0, 1, 1], [], []>} : vector<8x32xbf16>, vector<32x32xbf16>, vector<8x32xf32> -> vector<8x32xf32>
    %c0_32 = arith.constant 0 : index
    %c0_33 = arith.constant 0 : index
    %123 = vector.load %arg6[%c0_32, %c0_33] : memref<1x32xf32, #tpu.memory_space<vmem>>, vector<1x32xf32>
    %124 = vector.broadcast %123 : vector<1x32xf32> to vector<8x32xf32>
    %125 = arith.addf %122, %124 : vector<8x32xf32>
    %126 = arith.addf %1, %125 : vector<8x32xf32>
    %c0_34 = arith.constant 0 : index
    %c0_35 = arith.constant 0 : index
    %127 = vector.load %arg7[%c0_34, %c0_35] : memref<1x32xf32, #tpu.memory_space<vmem>>, vector<1x32xf32>
    %c0_36 = arith.constant 0 : index
    %c0_37 = arith.constant 0 : index
    %128 = vector.load %arg8[%c0_36, %c0_37] : memref<1x32xf32, #tpu.memory_space<vmem>>, vector<1x32xf32>
    %cst_38 = arith.constant dense<0.000000e+00> : vector<8xf32>
    %129 = vector.multi_reduction <add>, %126, %cst_38 [1] : vector<8x32xf32> to vector<8xf32>
    %130 = vector.shape_cast %129 : vector<8xf32> to vector<8x1xf32>
    %cst_39 = arith.constant 3.200000e+01 : f32
    %131 = vector.broadcast %cst_39 : f32 to vector<8x1xf32>
    %132 = arith.divf %130, %131 : vector<8x1xf32>
    %133 = vector.broadcast %132 : vector<8x1xf32> to vector<8x32xf32>
    %134 = arith.subf %126, %133 : vector<8x32xf32>
    %135 = arith.mulf %134, %134 : vector<8x32xf32>
    %cst_40 = arith.constant dense<0.000000e+00> : vector<8xf32>
    %136 = vector.multi_reduction <add>, %135, %cst_40 [1] : vector<8x32xf32> to vector<8xf32>
    %137 = vector.shape_cast %136 : vector<8xf32> to vector<8x1xf32>
    %cst_41 = arith.constant 3.200000e+01 : f32
    %138 = vector.broadcast %cst_41 : f32 to vector<8x1xf32>
    %139 = arith.divf %137, %138 : vector<8x1xf32>
    %cst_42 = arith.constant 9.99999974E-6 : f32
    %140 = vector.broadcast %cst_42 : f32 to vector<8x1xf32>
    %141 = arith.addf %139, %140 : vector<8x1xf32>
    %142 = math.rsqrt %141 : vector<8x1xf32>
    %143 = vector.broadcast %142 : vector<8x1xf32> to vector<8x32xf32>
    %144 = arith.mulf %134, %143 : vector<8x32xf32>
    %145 = vector.broadcast %127 : vector<1x32xf32> to vector<8x32xf32>
    %146 = arith.mulf %144, %145 : vector<8x32xf32>
    %147 = vector.broadcast %128 : vector<1x32xf32> to vector<8x32xf32>
    %148 = arith.addf %146, %147 : vector<8x32xf32>
    %149 = arith.truncf %148 : vector<8x32xf32> to vector<8x32xbf16>
    %c0_43 = arith.constant 0 : index
    %c0_44 = arith.constant 0 : index
    %150 = vector.load %arg9[%c0_43, %c0_44] : memref<32x64xbf16, #tpu.memory_space<vmem>>, vector<32x64xbf16>
    %cst_45 = arith.constant dense<0.000000e+00> : vector<8x64xf32>
    %151 = tpu.matmul %149, %150, %cst_45 {dimension_numbers = #tpu.dot_dimension_numbers<[1], [0], [0], [1], [0, 0, 1, 1], [], []>} : vector<8x32xbf16>, vector<32x64xbf16>, vector<8x64xf32> -> vector<8x64xf32>
    %c0_46 = arith.constant 0 : index
    %c0_47 = arith.constant 0 : index
    %152 = vector.load %arg10[%c0_46, %c0_47] : memref<1x64xf32, #tpu.memory_space<vmem>>, vector<1x64xf32>
    %153 = vector.broadcast %152 : vector<1x64xf32> to vector<8x64xf32>
    %154 = arith.addf %151, %153 : vector<8x64xf32>
    %cst_48 = arith.constant 0.000000e+00 : f32
    %155 = vector.broadcast %cst_48 : f32 to vector<8x64xf32>
    %156 = arith.maximumf %154, %155 : vector<8x64xf32>
    %157 = arith.truncf %156 : vector<8x64xf32> to vector<8x64xbf16>
    %c0_49 = arith.constant 0 : index
    %c0_50 = arith.constant 0 : index
    %158 = vector.load %arg11[%c0_49, %c0_50] : memref<64x32xbf16, #tpu.memory_space<vmem>>, vector<64x32xbf16>
    %cst_51 = arith.constant dense<0.000000e+00> : vector<8x32xf32>
    %159 = tpu.matmul %157, %158, %cst_51 {dimension_numbers = #tpu.dot_dimension_numbers<[1], [0], [0], [1], [0, 0, 1, 1], [], []>} : vector<8x64xbf16>, vector<64x32xbf16>, vector<8x32xf32> -> vector<8x32xf32>
    %c0_52 = arith.constant 0 : index
    %c0_53 = arith.constant 0 : index
    %160 = vector.load %arg12[%c0_52, %c0_53] : memref<1x32xf32, #tpu.memory_space<vmem>>, vector<1x32xf32>
    %161 = vector.broadcast %160 : vector<1x32xf32> to vector<8x32xf32>
    %162 = arith.addf %159, %161 : vector<8x32xf32>
    %163 = arith.addf %126, %162 : vector<8x32xf32>
    %164 = vector.shape_cast %163 : vector<8x32xf32> to vector<1x8x32xf32>
    %c0_54 = arith.constant 0 : index
    %c0_55 = arith.constant 0 : index
    %c0_56 = arith.constant 0 : index
    %165 = vector.load %arg13[%c0_54, %c0_55, %c0_56] : memref<1x8x32xf32, #tpu.memory_space<vmem>>, vector<1x8x32xf32>
    tpu.vector_store %arg13[%c0_54, %c0_55, %c0_56], %164 {strides = array<i32>} : memref<1x8x32xf32, #tpu.memory_space<vmem>>, vector<1x8x32xf32>,
    return
  }
  func.func @transform_0(%arg0: i32) -> (i32, i32, i32) {
    %c0_i32 = arith.constant 0 : i32
    %c0_i32_0 = arith.constant 0 : i32
    %c0_i32_1 = arith.constant 0 : i32
    return %arg0, %c0_i32, %c0_i32_0 : i32, i32, i32
  }
  func.func @transform_1(%arg0: i32) -> (i32, i32) {
    %c0_i32 = arith.constant 0 : i32
    %c0_i32_0 = arith.constant 0 : i32
    %c0_i32_1 = arith.constant 0 : i32
    return %c0_i32, %c0_i32_0 : i32, i32
  }
  func.func @transform_2(%arg0: i32) -> (i32, i32) {
    %c0_i32 = arith.constant 0 : i32
    %c0_i32_0 = arith.constant 0 : i32
    %c0_i32_1 = arith.constant 0 : i32
    return %c0_i32, %c0_i32_0 : i32, i32
  }
  func.func @transform_3(%arg0: i32) -> (i32, i32) {
    %c0_i32 = arith.constant 0 : i32
    %c0_i32_0 = arith.constant 0 : i32
    %c0_i32_1 = arith.constant 0 : i32
    return %c0_i32, %c0_i32_0 : i32, i32
  }
  func.func @transform_4(%arg0: i32) -> (i32, i32) {
    %c0_i32 = arith.constant 0 : i32
    %c0_i32_0 = arith.constant 0 : i32
    %c0_i32_1 = arith.constant 0 : i32
    return %c0_i32, %c0_i32_0 : i32, i32
  }
  func.func @transform_5(%arg0: i32) -> (i32, i32) {
    %c0_i32 = arith.constant 0 : i32
    %c0_i32_0 = arith.constant 0 : i32
    %c0_i32_1 = arith.constant 0 : i32
    return %c0_i32, %c0_i32_0 : i32, i32
  }
  func.func @transform_6(%arg0: i32) -> (i32, i32) {
    %c0_i32 = arith.constant 0 : i32
    %c0_i32_0 = arith.constant 0 : i32
    %c0_i32_1 = arith.constant 0 : i32
    return %c0_i32, %c0_i32_0 : i32, i32
  }
  func.func @transform_7(%arg0: i32) -> (i32, i32) {
    %c0_i32 = arith.constant 0 : i32
    %c0_i32_0 = arith.constant 0 : i32
    %c0_i32_1 = arith.constant 0 : i32
    return %c0_i32, %c0_i32_0 : i32, i32
  }
  func.func @transform_8(%arg0: i32) -> (i32, i32) {
    %c0_i32 = arith.constant 0 : i32
    %c0_i32_0 = arith.constant 0 : i32
    %c0_i32_1 = arith.constant 0 : i32
    return %c0_i32, %c0_i32_0 : i32, i32
  }
  func.func @transform_9(%arg0: i32) -> (i32, i32) {
    %c0_i32 = arith.constant 0 : i32
    %c0_i32_0 = arith.constant 0 : i32
    %c0_i32_1 = arith.constant 0 : i32
    return %c0_i32, %c0_i32_0 : i32, i32
  }
  func.func @transform_10(%arg0: i32) -> (i32, i32) {
    %c0_i32 = arith.constant 0 : i32
    %c0_i32_0 = arith.constant 0 : i32
    %c0_i32_1 = arith.constant 0 : i32
    return %c0_i32, %c0_i32_0 : i32, i32
  }
  func.func @transform_11(%arg0: i32) -> (i32, i32) {
    %c0_i32 = arith.constant 0 : i32
    %c0_i32_0 = arith.constant 0 : i32
    %c0_i32_1 = arith.constant 0 : i32
    return %c0_i32, %c0_i32_0 : i32, i32
  }
  func.func @transform_12(%arg0: i32) -> (i32, i32, i32) {
    %c0_i32 = arith.constant 0 : i32
    %c0_i32_0 = arith.constant 0 : i32
    %c0_i32_1 = arith.constant 0 : i32
    return %arg0, %c0_i32, %c0_i32_0 : i32, i32, i32
  }
}

</mosaic_0001>

<bundles_post_ra>
// kernel: transformer_forward.3
= control target key start
LH: loop header
LB: loop body
LE: loop exit
PB: predicated region body
PF: predicated region fallthrough
CT: control target
= control target key end

     0   :  { %17 = vsyncpa [#allocation3], 0  ;;  %s1569_s0 = inlined_call_operand.hbm [shape: f32[2,8,32], index: 0, kind: input, shape index: {}, may-alias: {0,12}]   ;;  %s1570_s1 = inlined_call_operand.vmem [shape: f32[1,32], index: 1, kind: input, shape index: {}]   ;;  %s1571_s2 = inlined_call_operand.vmem [shape: f32[1,32], index: 2, kind: input, shape index: {}]   ;;  %s1572_s3 = inlined_call_operand.vmem [shape: bf16[32,96], index: 3, kind: input, shape index: {}]   ;;  %s1573_s4 = inlined_call_operand.vmem [shape: bf16[32,32], index: 4, kind: input, shape index: {}]   ;;  %s1574_s5 = inlined_call_operand.vmem [shape: f32[1,32], index: 5, kind: input, shape index: {}]   ;;  %s1575_s6 = inlined_call_operand.vmem [shape: f32[1,32], index: 6, kind: input, shape index: {}]   ;;  %s1576_s7 = inlined_call_operand.vmem [shape: f32[1,32], index: 7, kind: input, shape index: {}]   ;;  %s1577_s8 = inlined_call_operand.vmem [shape: bf16[32,64], index: 8, kind: input, shape index: {}]   ;;  %s1578_s9 = inlined_call_operand.vmem [shape: f32[1,64], index: 9, kind: input, shape index: {}]   ;;  %s1579_s10 = inlined_call_operand.vmem [shape: bf16[64,32], index: 10, kind: input, shape index: {}]   ;;  %s1580_s11 = inlined_call_operand.vmem [shape: f32[1,32], index: 11, kind: input, shape index: {}]   ;;  %s1581_s12 = inlined_call_operand.hbm [shape: f32[2,8,32], index: 12, kind: output, shape index: {}, may-alias: {0,12}]  }
   0x1   :  { %19 = vsyncpa [#allocation3 + $0x1], 0 }
   0x2   :  { %20 = vsyncpa [#allocation4], 0 }
   0x3   :  { %22 = vsyncpa [#allocation4 + $0x1], 0  ;;  %s1343_s21 = smov 0   ;;  %s1345_s22 = smov 0  }
   0x4   :  { %s1347_s23 = smov 0   ;;  %s1349_s24 = smov 0  }
   0x5 LB: > { %1589 = sst [smem:[#allocation8_spill]] %s1249_s21  ;;  %s1364_s25 = sadd.s32 4294967295, %s1261_s24   ;;  %s1261_s24 = sphi %s1349_s24, %s1604_s24   ;;  %s1257_s23 = sphi %s1347_s23, %s1609_s23   ;;  %s1253_s22 = sphi %s1345_s22, %s1608_s22   ;;  %s1249_s21 = sphi %s1343_s21, %s1607_s21  }
   0x6   : > { %1590 = sst [smem:[#allocation9_spill]] %s1257_s23  ;;  %s1001_s26 = sadd.s32 4294967294, %s1261_s24  }
   0x7   : > { %s1368_s27 = sadd.s32 1, %s1261_s24   ;;  %s35_s28 = sadd.s32 1, %s1257_s23 }
   0x8   : > { %1591 = sst [smem:[#allocation10_spill]] %s1368_s27  ;;  %s32_s29 = ssub.s32 %s1261_s24, %s1368_s27 }
   0x9   : > { %p42_p0 = scmp.ne.s32.totalorder %s1257_s23, %s1253_s22  ;;  %p33_p1 = scmp.eq.s32.totalorder %s32_s29, 0 }
   0xa   : > { %p43_p2 = scmp.eq.s32.totalorder %s1261_s24, 0  ;;  %p48_p3 = scmp.ne.s32.totalorder %s1253_s22, %s1249_s21 }
   0xb   : > { %p49_p4 = scmp.eq.s32.totalorder %s1364_s25, 0  ;;  %p303_p7 = scmp.eq.s32.totalorder %s1364_s25, 1 }
   0xc   : > { %s1380_s30 = scalar_select %p33_p1, %s1257_s23, %s35_s28  }
   0xd   : > { %p1382_p5 = por %p43_p2, %p42_p0  ;;  %p1386_p6 = por %p49_p4, %p48_p3 }
   0xe   : > { %1592 = sst [smem:[#allocation11_spill]] %s1380_s30  ;;  %p309_p8 = scmp.eq.s32.totalorder %s1001_s26, 1 }
   0xf   : > { %p1087_p10 = scmp.lt.s32.totalorder %s1261_s24, 2  ;;  %p1393_p11 = por %p303_p7, %p42_p0 }
  0x10   : > { %p1397_p12 = por %p309_p8, %p48_p3  ;;  %s362_s17 = sand.u32 1, %s1257_s23  }
  0x11   : > { %s1595_s15 = scalar_select %p1393_p11, 1, 0 }
  0x12   : > { %s1597_s16 = scalar_select %p1397_p12, 1, 0 }
  0x13   : > { %1596 = sst [smem:[#allocation12_spill]] %s1595_s15  ;;  %s1005_s18 = sshll.u32 %s1261_s24, 3 }
  0x14   : > { %1598 = sst [smem:[#allocation13_spill]] %s1597_s16  ;;  %s1004_s19 = sshll.u32 %s362_s17, 3 }
  0x15   : > { %s370_s29 = scalar_lea.hbm %s1569_s0, %s1005_s18  ;;  %s366_s26 = scalar_lea.vmem [#allocation2], %s1004_s19 }
  0x16   : > { %s372_s30 = sshll.u32 %s370_s29, 4  ;;  %s374_s27 = sshll.u32 %s366_s26, 4  ;;  %s373_s30 = int_to_ptr.hbm [resolvable:$true] %s372_s30  ;;  %s375_s27 = int_to_ptr.vmem [resolvable:$true] %s374_s27 }
  0x17   : > { %p1408_p13 = pnand %p1087_p10, %p1382_p5  ;;  %p1006_p0 = scmp.ge.s32.totalorder %s1261_s24, 1 }
  0x18   : > { %p379_p1 = scmp.lt.s32.totalorder %s1261_s24, 3  ;;  %s363_s23 = scalar_lea.sflag [#allocation3], %s362_s17 }
  0x19   : > { %s1165_s16 = sshra.s32 %s373_s30, 4  ;;  %p1169_p3 = pneg %p1408_p13  ;;  %s1166_s16 = int_to_ptr.hbm [resolvable:$true] %s1165_s16 }
  0x1a   : > { %s1167_s15 = scalar_lea.hbm %s1166_s16, 8  ;;  %s1172_s13 = scalar_lea.hbm %s1569_s0, 16 }
  0x1b   : > { %p1168_p2 = scmp.ne.s32.totalorder %s1166_s16, %s1167_s15  ;;  %p1173_p5 = scmp.lt.s32.totalorder %s1166_s16, %s1569_s0 }
  0x1c   : > { %p1174_p8 = scmp.lt.s32.totalorder %s1172_s13, %s1167_s15 }
  0x1d   : > { %p1170_p4 = pnand %p1169_p3, %p1168_p2 }
  0x1e   : > { %p1175_p10 = por %p1174_p8, %p1173_p5 }
  0x1f   : > { %p1171_p7 = pneg %p1170_p4 }
  0x21   : > { %p1176_p9 = pnand %p1175_p10, %p1171_p7 }
  0x23   : > { %1179 = shalt.err (!%p1176_p9)
}
  0x24   : > { %1082 = dma.hbm_to_vmem [thread:$0]  (!%p1408_p13), %s373_s30, 128, %s375_s27, %s363_s23  }
  0x25   : > { %p380_p2 = pnand %p1006_p0, %p379_p1 }
  0x26   : > { %s1429_s17 = sand.u32 (!%p380_p2), 1, %s1253_s22  }
  0x27   : > { %383 = sbr.rel (%p380_p2) target bundleno = 1908 (0x774), region = 68  ;;  %s1007_s15 = sshll.u32 (!%p380_p2), %s1429_s17, 3 }
  0x28   : > { %s386_s16 = scalar_lea.sflag (!%p380_p2), [#allocation3], %s1429_s17  ;;  %s389_s29 = scalar_lea.vmem (!%p380_p2), [#allocation2], %s1007_s15 }
  0x2c   : > { %1240 = dma.done.wait (%p1386_p6), %s386_s16, 128  }
  0x2d   : > { %1242 = vsyncadd (%p1386_p6), %s386_s16, 4294967168  ;;  %vm435_vm0 = vcmask 261120   ;;  %v1439_v0 = vld [vmem:[%s389_s29] sm:$0xff]  ;;  %v1263_v2 = vmov 32.0   ;;  %s1264_s13 = smov 104   ;;  %s1265_s20 = smov 120  }
  0x2e   : > { %v436_v1 = vsel %vm435_vm0, %v1439_v0, 0.0  ;;  %1143 = vrcp.f32 %v1263_v2  ;;  %v1066_v14 = vld [vmem:[%s1572_s3 + $0x8] sm:$0xff]  ;;  %v1065_v15 = vld [vmem:[%s1572_s3] sm:$0xff]  ;;  %s1266_s28 = smov 96   ;;  %s1267_s16 = smov 72   ;;  %vm512_vm5 = vcmask 64512  }
  0x2f   : > { %437 = vadd.xlane.f32.xlu0 %v436_v1  ;;  %499 = vmatpush.bf16.msra.mxu0 %v1066_v14  ;;  %v1136_v25 = vld [vmem:[%s1570_s1] ss:$0 sm:$0xff]  ;;  %s1268_s29 = smov 88   ;;  %s1269_s21 = smov 112   ;;  %vm549_vm6 = vcmask 1043456   ;;  %vm747_vm7 = vcmask 130048  }
  0x30   : > { %v1137_v28 = vld [vmem:[%s1571_s2] ss:$0 sm:$0xff]  ;;  %s1270_s23 = smov 80   ;;  %s1271_s27 = smov 64   ;;  %vm749_vm8 = vcmask 195584   ;;  %vm896_vm12 = vcmask 523264  }
  0x31   : > { %s1272_s30 = smov 56   ;;  %s1273_s14 = smov 40  }
  0x32   : > { %s1274_s26 = smov 48   ;;  %s1275_s18 = smov 8  }
  0x33   : > { %500 = vmatpush.bf16.msra.mxu0 %v1065_v15  ;;  %s1276_s19 = smov 16  }
  0x34   : > { %v1144_v3 = vpop.eup %1143 }
  0x35   : > { %v440_v4 = vmul.f32 32.0, %v1144_v3  ;;  %vm444_vm1 = vweird.f32 %v1144_v3 }
  0x37   : > { %v441_v5 = vsub.f32 1.0, %v440_v4 }
  0x39   : > { %v442_v6 = vmul.f32 %v1144_v3, %v441_v5 }
  0x3b   : > { %v443_v7 = vadd.f32 %v1144_v3, %v442_v6 }
  0x3d   : > { %v1443_v8 = vsel %vm444_vm1, %v1144_v3, %v443_v7 }
  0xa2   : > { %v438_v9 = vpop.xlane.xlu0 %437 }
  0xa3   : > { %v446_v10 = vmul.f32 %v1443_v8, %v438_v9 }
  0xa5   : > { %v447_v11 = vsub.f32 %v1439_v0, %v446_v10 }
  0xa7   : > { %v448_v12 = vmul.f32 %v447_v11, %v447_v11 }
  0xa9   : > { %v449_v13 = vsel %vm435_vm0, %v448_v12, 0.0 }
  0xaa   : > { %450 = vadd.xlane.f32.xlu0 %v449_v13 }
 0x11d   : > { %v451_v16 = vpop.xlane.xlu0 %450 }
 0x11e   : > { %v452_v17 = vmul.f32 %v451_v16, %v1443_v8 }
 0x120   : > { %v453_v18 = vadd.f32 1e-05, %v452_v17 }
 0x122   : > { %1145 = vrsqrt.f32 %v453_v18  ;;  %vm460_vm3 = vweird.f32 %v453_v18 }
 0x128   : > { %v1146_v19 = vpop.eup %1145 }
 0x129   : > { %v455_v20 = vmul.f32 %v1146_v19, %v453_v18  ;;  %vm461_vm2 = vweird.f32 %v1146_v19 }
 0x12a   : > { %vm462_vm4 = vmor %vm460_vm3, %vm461_vm2 }
 0x12b   : > { %v456_v21 = vmul.f32 %v1146_v19, %v455_v20 }
 0x12d   : > { %v457_v22 = vmul.f32 0.5, %v456_v21 }
 0x12f   : > { %v458_v23 = vsub.f32 1.5, %v457_v22 }
 0x131   : > { %v459_v24 = vmul.f32 %v1146_v19, %v458_v23 }
 0x133   : > { %v463_v26 = vsel %vm462_vm4, %v1146_v19, %v459_v24 }
 0x134   : > { %v464_v27 = vmul.f32 %v463_v26, %v447_v11 }
 0x136   : > { %v468_v29 = vmul.f32 %v1136_v25, %v464_v27 }
 0x138   : > { %v472_v30 = vadd.f32 %v1137_v28, %v468_v29 }
 0x13a   : > { %v473_v31 = vpack.c.bf16 %v472_v30, %v472_v30 }
 0x13c   : > { %1017 = vmatmul.msk.bf16.vlgmr.msra.gmra.mxu0 %vm435_vm0, %v473_v31 }
 0x1b9   : > { %v502_v32 = vpop.f32.mrf.mxu0 }
 0x1ba   : > { %v506_v33 = vpack.c.bf16 %v502_v32, %v502_v32 }
 0x1bc   : > { %v508_v34 = vunpack.c.l.b16 %v506_v33 }
 0x1be   : > { %v509_v35 = vpack.c.b16 %v508_v34, %v508_v34 }
 0x1c0   : > { %678 = vrot.lane.b32.xlu0 %v509_v35, %s1264_s13  ;;  %566 = vrot.lane.b32.xlu2 %v509_v35, %s1265_s20  ;;  %s1277_s13 = smov 24  }
 0x1c1   : > { %510 = vrot.lane.b32.xlu1 %v509_v35, %s1266_s28  ;;  %v504_v36 = vpop.f32.mrf.mxu0 }
 0x1c8   : > { %680 = vrot.lane.b32.xlu2 %v509_v35, %s1267_s16 }
 0x1c9   : > { %568 = vrot.lane.b32.xlu1 %v509_v35, %s1268_s29 }
 0x1d0   : > { %622 = vrot.lane.b32.xlu2 %v509_v35, %s1269_s21 }
 0x1d1   : > { %624 = vrot.lane.b32.xlu1 %v509_v35, %s1270_s23  ;;  %s430_s23 = scalar_lea.vmem [#allocation5], %s1007_s15  ;;  %s1215_s15 = scalar_lea.hbm %s1581_s12, 16 }
 0x21a   : > { %v567_v37 = vpop.permute.xlu2 %566 }
 0x222   : > { %v681_v40 = vpop.permute.xlu2 %680 }
 0x223   : > { %v686_v43 = vsel %vm512_vm5, %v681_v40, 0 }
 0x22a   : > { %v623_v46 = vpop.permute.xlu2 %622 }
 0x232   : > { %v679_v47 = vpop.permute.xlu0 %678 }
 0x233   : > { %v511_v38 = vpop.permute.xlu1 %510 }
 0x234   : > { %v517_v39 = vsel %vm512_vm5, %v511_v38, 0 }
 0x235   : > { %526 = vmatpush.bf16.xpose.msra.mxu1 %v517_v39 }
 0x23b   : > { %v569_v41 = vpop.permute.xlu1 %568 }
 0x23c   : > { %1018 = vmatmul.msk.bf16.vlgmr.msra.gmra.mxu1 %vm512_vm5, %v506_v33  ;;  %v574_v42 = vsel %vm512_vm5, %v569_v41, 0 }
 0x23d   : > { %583 = vmatpush.bf16.xpose.msra.mxu3 %v574_v42 }
 0x243   : > { %v625_v44 = vpop.permute.xlu1 %624 }
 0x244   : > { %1020 = vmatmul.msk.bf16.vlgmr.msra.gmra.mxu3 %vm512_vm5, %v567_v37  ;;  %v630_v45 = vsel %vm512_vm5, %v625_v44, 0 }
 0x245   : > { %695 = vmatpush.bf16.xpose.msrb.mxu3 %v686_v43  ;;  %639 = vmatpush.bf16.xpose.msrb.mxu0 %v630_v45 }
 0x24c   : > { %1022 = vmatmul.msk.bf16.vlgmr.msrb.gmra.mxu0 %vm512_vm5, %v623_v46 }
 0x254   : > { %1024 = vmatmul.msk.bf16.vlgmr.msrb.gmra.mxu3 %vm512_vm5, %v679_v47 }
 0x2b9   : > { %v528_v48 = vpop.f32.mrf.mxu1 }
 0x2ba   : > { %v532_v49 = vsel %vm512_vm5, %v528_v48, -inf }
 0x2bb   : > { %533 = vmax.xlane.f32.xlu1 %v532_v49 }
 0x2c1   : > { %v530_v50 = vpop.f32.mrf.mxu1 }
 0x2c2   : > { %v1068_v50 = vld [vmem:[%s1573_s4 + $0x8] sm:$0xff] }
 0x2c3   : > { %781 = vmatpush.bf16.msra.mxu0 %v1068_v50 }
 0x2c7   : > { %v585_v51 = vpop.f32.mrf.mxu3 }
 0x2c8   : > { %v589_v52 = vsel %vm512_vm5, %v585_v51, -inf }
 0x2c9   : > { %590 = vmax.xlane.f32.xlu2 %v589_v52  ;;  %v641_v53 = vpop.f32.mrf.mxu0 }
 0x2ca   : > { %v645_v55 = vsel %vm512_vm5, %v641_v53, -inf }
 0x2cf   : > { %v587_v54 = vpop.f32.mrf.mxu3 }
 0x2d1   : > { %646 = vmax.xlane.f32.xlu2 %v645_v55  ;;  %v643_v56 = vpop.f32.mrf.mxu0 }
 0x2d7   : > { %v697_v57 = vpop.f32.mrf.mxu3 }
 0x2d8   : > { %v701_v58 = vsel %vm512_vm5, %v697_v57, -inf }
 0x2d9   : > { %702 = vmax.xlane.f32.xlu0 %v701_v58 }
 0x2df   : > { %v699_v59 = vpop.f32.mrf.mxu3 }
 0x2e0   : > { %v1138_v59 = vld [vmem:[%s1574_s5] ss:$0 sm:$0xff] }
 0x2e9   : > { %544 = vrot.lane.b32.xlu2 %v509_v35, %s1271_s27  ;;  %s928_s27 = sshll.u32 %s430_s23, 4  ;;  %s929_s27 = int_to_ptr.vmem [resolvable:$true] %s928_s27 }
 0x2ed   : > { %601 = vrot.lane.b32.xlu0 %v509_v35, %s1272_s30 }
 0x2f1   : > { %713 = vrot.lane.b32.xlu2 %v509_v35, %s1273_s14 }
 0x2f5   : > { %657 = vrot.lane.b32.xlu0 %v509_v35, %s1274_s26 }
 0x32e   : > { %v534_v60 = vpop.xlane.xlu1 %533 }
 0x32f   : > { %v535_v61 = vsub.f32 %v528_v48, %v534_v60 }
 0x331   : > { %v536_v62 = vmul.f32 1.442695, %v535_v61 }
 0x333   : > { %1147 = vpow2.f32 %v536_v62 }
 0x339   : > { %v1148_v63 = vpop.eup %1147 }
 0x33a   : > { %v538_v1 = vsel %vm512_vm5, %v1148_v63, 0.0 }
 0x33b   : > { %539 = vadd.xlane.f32.xlu1 %v538_v1 }
 0x33c   : > { %v591_v2 = vpop.xlane.xlu2 %590 }
 0x33d   : > { %v592_v3 = vsub.f32 %v585_v51, %v591_v2  ;;  %v1067_v51 = vld [vmem:[%s1573_s4] sm:$0xff] }
 0x33e   : > { %782 = vmatpush.bf16.msra.mxu0 %v1067_v51 }
 0x33f   : > { %v593_v4 = vmul.f32 1.442695, %v592_v3 }
 0x341   : > { %1149 = vpow2.f32 %v593_v4 }
 0x344   : > { %v647_v5 = vpop.xlane.xlu2 %646 }
 0x345   : > { %v648_v13 = vsub.f32 %v641_v53, %v647_v5 }
 0x347   : > { %v1150_v6 = vpop.eup %1149  ;;  %v649_v15 = vmul.f32 1.442695, %v648_v13 }
 0x348   : > { %v595_v7 = vsel %vm512_vm5, %v1150_v6, 0.0 }
 0x349   : > { %596 = vadd.xlane.f32.xlu1 %v595_v7  ;;  %v1070_v7 = vld [vmem:[%s1577_s8 + $0x8] sm:$0xff] }
 0x34c   : > { %v703_v9 = vpop.xlane.xlu0 %702  ;;  %v545_v10 = vpop.permute.xlu2 %544 }
 0x34d   : > { %v704_v11 = vsub.f32 %v697_v57, %v703_v9  ;;  %v551_v12 = vsel %vm549_vm6, %v545_v10, 0  ;;  %v1074_v9 = vld [vmem:[%s1579_s10 + $0x18] sm:$0xff] }
 0x34e   : > { %560 = vmatpush.bf16.msra.mxu2 %v551_v12  ;;  %904 = vmatpush.bf16.msra.mxu3 %v1074_v9  ;;  %v1073_v12 = vld [vmem:[%s1579_s10 + $0x10] sm:$0xff] }
 0x34f   : > { %v705_v14 = vmul.f32 1.442695, %v704_v11 }
 0x351   : > { %1151 = vpow2.f32 %v705_v14  ;;  %v1072_v14 = vld [vmem:[%s1579_s10 + $0x8] sm:$0xff] }
 0x352   : > { %1153 = vpow2.f32 %v649_v15  ;;  %905 = vmatpush.bf16.msra.mxu3 %v1073_v12 }
 0x354   : > { %v714_v27 = vpop.permute.xlu2 %713 }
 0x355   : > { %v719_v29 = vsel %vm549_vm6, %v714_v27, 0  ;;  %v1071_v27 = vld [vmem:[%s1579_s10] sm:$0xff] }
 0x356   : > { %906 = vmatpush.bf16.msra.mxu3 %v1072_v14 }
 0x357   : > { %v1152_v16 = vpop.eup %1151 }
 0x358   : > { %v707_v17 = vsel %vm512_vm5, %v1152_v16, 0.0  ;;  %v1154_v18 = vpop.eup %1153 }
 0x359   : > { %708 = vadd.xlane.f32.xlu1 %v707_v17  ;;  %v651_v20 = vsel %vm512_vm5, %v1154_v18, 0.0 }
 0x35a   : > { %907 = vmatpush.bf16.msra.mxu3 %v1071_v27 }
 0x35f   : > { %v602_v19 = vpop.permute.xlu0 %601 }
 0x360   : > { %v607_v21 = vsel %vm549_vm6, %v602_v19, 0 }
 0x361   : > { %652 = vadd.xlane.f32.xlu1 %v651_v20  ;;  %616 = vmatpush.bf16.msrb.mxu2 %v607_v21  ;;  %v1139_v20 = vld [vmem:[%s1575_s6] ss:$0 sm:$0xff] }
 0x367   : > { %v658_v22 = vpop.permute.xlu0 %657 }
 0x368   : > { %v663_v23 = vsel %vm549_vm6, %v658_v22, 0 }
 0x369   : > { %672 = vmatpush.bf16.msrb.mxu1 %v663_v23  ;;  %v1140_v23 = vld [vmem:[%s1576_s7] ss:$0 sm:$0xff] }
 0x36d   : > { %851 = vmatpush.bf16.msra.mxu1 %v1070_v7 }
 0x3ae   : > { %v540_v24 = vpop.xlane.xlu1 %539 }
 0x3af   : > { %1155 = vrcp.f32 %v540_v24 }
 0x3b5   : > { %v1156_v25 = vpop.eup %1155 }
 0x3b6   : > { %v542_v26 = vmul.f32 %v1156_v25, %v1148_v63 }
 0x3b8   : > { %v543_v28 = vpack.c.bf16 %v542_v26, %v542_v26 }
 0x3ba   : > { %1019 = vmatmul.msk.bf16.vlgmr.msra.gmra.mxu2 %vm512_vm5, %v543_v28  ;;  %v1141_v28 = vld [vmem:[%s1578_s9] ss:$0 sm:$0xff] }
 0x3bb   : > { %728 = vmatpush.bf16.msra.mxu2 %v719_v29 }
 0x3bc   : > { %v597_v30 = vpop.xlane.xlu1 %596 }
 0x3bd   : > { %1157 = vrcp.f32 %v597_v30 }
 0x3c3   : > { %v1158_v31 = vpop.eup %1157 }
 0x3c4   : > { %v599_v32 = vmul.f32 %v1158_v31, %v1150_v6 }
 0x3c6   : > { %v600_v33 = vpack.c.bf16 %v599_v32, %v599_v32 }
 0x3ca   : > { %1021 = vmatmul.msk.bf16.vlgmr.msrb.gmra.mxu2 %vm512_vm5, %v600_v33 }
 0x3cc   : > { %v709_v34 = vpop.xlane.xlu1 %708 }
 0x3cd   : > { %1159 = vrcp.f32 %v709_v34  ;;  %v1142_v34 = vld [vmem:[%s1580_s11] ss:$0 sm:$0xff] }
 0x3d3   : > { %v1160_v35 = vpop.eup %1159 }
 0x3d4   : > { %v711_v36 = vmul.f32 %v1160_v35, %v1152_v16  ;;  %v653_v37 = vpop.xlane.xlu1 %652 }
 0x3d5   : > { %1161 = vrcp.f32 %v653_v37 }
 0x3d6   : > { %v712_v38 = vpack.c.bf16 %v711_v36, %v711_v36 }
 0x3da   : > { %1025 = vmatmul.msk.bf16.vlgmr.msra.gmra.mxu2 %vm512_vm5, %v712_v38 }
 0x3db   : > { %v1162_v39 = vpop.eup %1161 }
 0x3dc   : > { %v655_v40 = vmul.f32 %v1162_v39, %v1154_v18 }
 0x3de   : > { %v656_v41 = vpack.c.bf16 %v655_v40, %v655_v40 }
 0x3e0   : > { %1023 = vmatmul.msk.bf16.vlgmr.msrb.gmra.mxu1 %vm512_vm5, %v656_v41 }
 0x43d   : > { %v562_v42 = vpop.f32.mrf.mxu2 }
 0x445   : > { %v564_v43 = vpop.f32.mrf.mxu2 }
 0x44d   : > { %v618_v44 = vpop.f32.mrf.mxu2 }
 0x44e   : > { %735 = vrot.lane.b32.xlu1 %v618_v44, %s1275_s18 }
 0x455   : > { %v620_v45 = vpop.f32.mrf.mxu2 }
 0x45d   : > { %v674_v46 = vpop.f32.mrf.mxu1  ;;  %v730_v47 = vpop.f32.mrf.mxu2 }
 0x45e   : > { %739 = vrot.lane.b32.xlu2 %v674_v46, %s1276_s19  ;;  %743 = vrot.lane.b32.xlu0 %v730_v47, %s1277_s13  ;;  %s1062_s19 = sshll.u32 %s1364_s25, 3  ;;  %s916_s25 = scalar_lea.sflag [#allocation4], %s1429_s17 }
 0x45f   : > { %s926_s21 = scalar_lea.hbm %s1581_s12, %s1062_s19 }
 0x460   : > { %s930_s30 = sshll.u32 %s926_s21, 4  ;;  %s931_s30 = int_to_ptr.hbm [resolvable:$true] %s930_s30 }
 0x461   : > { %s1209_s14 = sshra.s32 %s931_s30, 4  ;;  %s1210_s14 = int_to_ptr.hbm [resolvable:$true] %s1209_s14 }
 0x462   : > { %s1211_s26 = scalar_lea.hbm %s1210_s14, 8  ;;  %p1216_p0 = scmp.lt.s32.totalorder %s1210_s14, %s1581_s12 }
 0x463   : > { %p1212_p6 = scmp.ne.s32.totalorder %s1210_s14, %s1211_s26  ;;  %p1217_p1 = scmp.lt.s32.totalorder %s1215_s15, %s1211_s26 }
 0x465   : > { %v676_v48 = vpop.f32.mrf.mxu1  ;;  %v732_v49 = vpop.f32.mrf.mxu2  ;;  %p1213_p9 = pnand %p1212_p6, %p1393_p11  ;;  %p1218_p3 = por %p1217_p1, %p1216_p0 }
 0x467   : > { %p1214_p13 = pneg %p1213_p9 }
 0x469   : > { %p1219_p4 = pnand %p1218_p3, %p1214_p13 }
 0x4b8   : > { %v740_v54 = vpop.permute.xlu2 %739 }
 0x4c0   : > { %v736_v52 = vpop.permute.xlu1 %735 }
 0x4c1   : > { %v746_v53 = vsel %vm512_vm5, %v562_v42, %v736_v52 }
 0x4c2   : > { %v748_v56 = vsel %vm747_vm7, %v746_v53, %v740_v54 }
 0x4d0   : > { %v744_v55 = vpop.permute.xlu0 %743 }
 0x4d1   : > { %v750_v57 = vsel %vm749_vm8, %v748_v56, %v744_v55 }
 0x4d2   : > { %v751_v58 = vpack.c.bf16 %v750_v57, %v750_v57 }
 0x4d4   : > { %1034 = vmatmul.msk.bf16.vlgmr.msra.gmra.mxu0 %vm435_vm0, %v751_v58 }
 0x551   : > { %v784_v60 = vpop.f32.mrf.mxu0 }
 0x552   : > { %v785_v61 = vadd.f32 %v1138_v59, %v784_v60 }
 0x554   : > { %v788_v62 = vadd.f32 %v785_v61, %v1439_v0  ;;  %v1069_v0 = vld [vmem:[%s1577_s8] sm:$0xff] }
 0x555   : > { %852 = vmatpush.bf16.msra.mxu1 %v1069_v0 }
 0x556   : > { %v791_v63 = vsel %vm435_vm0, %v788_v62, 0.0 }
 0x557   : > { %792 = vadd.xlane.f32.xlu2 %v791_v63 }
 0x559   : > { %v786_v1 = vpop.f32.mrf.mxu0 }
 0x5ca   : > { %v793_v2 = vpop.xlane.xlu2 %792 }
 0x5cb   : > { %v794_v3 = vmul.f32 %v793_v2, %v1443_v8 }
 0x5cd   : > { %v795_v4 = vsub.f32 %v788_v62, %v794_v3 }
 0x5cf   : > { %v796_v5 = vmul.f32 %v795_v4, %v795_v4 }
 0x5d1   : > { %v797_v6 = vsel %vm435_vm0, %v796_v5, 0.0 }
 0x5d2   : > { %798 = vadd.xlane.f32.xlu0 %v797_v6 }
 0x645   : > { %v799_v10 = vpop.xlane.xlu0 %798 }
 0x646   : > { %v800_v11 = vmul.f32 %v799_v10, %v1443_v8 }
 0x648   : > { %v801_v13 = vadd.f32 1e-05, %v800_v11 }
 0x64a   : > { %1163 = vrsqrt.f32 %v801_v13  ;;  %vm808_vm10 = vweird.f32 %v801_v13 }
 0x650   : > { %v1164_v15 = vpop.eup %1163 }
 0x651   : > { %v803_v16 = vmul.f32 %v1164_v15, %v801_v13  ;;  %vm809_vm9 = vweird.f32 %v1164_v15 }
 0x652   : > { %vm810_vm11 = vmor %vm808_vm10, %vm809_vm9 }
 0x653   : > { %v804_v17 = vmul.f32 %v1164_v15, %v803_v16 }
 0x655   : > { %v805_v18 = vmul.f32 0.5, %v804_v17 }
 0x657   : > { %v806_v19 = vsub.f32 1.5, %v805_v18 }
 0x659   : > { %v807_v8 = vmul.f32 %v1164_v15, %v806_v19 }
 0x65b   : > { %v811_v21 = vsel %vm810_vm11, %v1164_v15, %v807_v8 }
 0x65c   : > { %v812_v22 = vmul.f32 %v811_v21, %v795_v4 }
 0x65e   : > { %v816_v24 = vmul.f32 %v1139_v20, %v812_v22 }
 0x660   : > { %v820_v25 = vadd.f32 %v1140_v23, %v816_v24 }
 0x662   : > { %v821_v26 = vpack.c.bf16 %v820_v25, %v820_v25 }
 0x664   : > { %1043 = vmatmul.msk.bf16.vlgmr.msra.gmra.mxu1 %vm435_vm0, %v821_v26 }
 0x6e1   : > { %v854_v29 = vpop.f32.mrf.mxu1 }
 0x6e2   : > { %v855_v30 = vadd.f32 %v1141_v28, %v854_v29 }
 0x6e4   : > { %v858_v31 = vmax.f32 %v855_v30, 0.0 }
 0x6e6   : > { %v859_v32 = vpack.c.bf16 %v858_v31, %v858_v31 }
 0x6e8   : > { %1060 = vmatmul.msk.bf16.vlgmr.msra.gmra.mxu3 %vm896_vm12, %v859_v32 }
 0x6e9   : > { %v856_v33 = vpop.f32.mrf.mxu1 }
 0x76b   : > { %v909_v35 = vpop.f32.mrf.mxu3 }
 0x76c   : > { %v910_v36 = vadd.f32 %v1142_v34, %v909_v35 }
 0x76e   : > { %v913_v37 = vadd.f32 %v910_v36, %v788_v62 }
 0x770   : > { %914 = vst.msk [vmem:[%s430_s23] sm:$0xff] %vm435_vm0, %v913_v37 }
 0x771   : > { %1222 = shalt.err (!%p1219_p4)
}
 0x772   : > { %1077 = dma.vmem_to_hbm [thread:$0]  (%p1393_p11), %s929_s27, 128, %s931_s30, %s916_s25  }
 0x773   : > { %v911_v38 = vpop.f32.mrf.mxu3 }
 0x774 PF: > { %s1601_s17 = sld [smem:[#allocation8_spill]]  ;;  %p1603_p7 = scmp.ge.s32.totalorder %s1261_s24, 2 }
 0x776   : > { %p1084_p5 = pnand %p1603_p7, %p1397_p12 }
 0x778   : > { %p1085_p8 = pneg %p1084_p5 }
 0x77a   : > { %s942_s16 = sand.u32 1, %s1601_s17  }
 0x77b   : > { %s943_s21 = scalar_lea.sflag [#allocation4], %s942_s16 }
 0x77c   : > { %1244 = dma.done.wait (%p1085_p8), %s943_s21, 128  }
 0x77d   : > { %1246 = vsyncadd (%p1085_p8), %s943_s21, 4294967168  ;;  %s1604_s24 = sld [smem:[#allocation10_spill]]  ;;  %s1607_s21 = smov %s1253_s22 }
 0x77e   : > { %s1605_s23 = sld [smem:[#allocation9_spill]] }
 0x77f   : > { %s1606_s14 = sld [smem:[#allocation11_spill]] }
 0x783   : > { %p25_p10 = scmp.ge.s32.totalorder %s1604_s24, 4  }
 0x784   : > { %s1608_s22 = smov %s1605_s23 }
 0x785   : > { %s1609_s23 = smov %s1606_s14  ;;  %27 = sbr.rel (!%p25_p10) target bundleno = 5 (0x5), region = 113 }
 0x78a   :  { %949 = vsyncpa [#allocation3], 1 }
 0x78b   :  { %951 = vsyncpa [#allocation3 + $0x1], 1 }
 0x78c   :  { %952 = vsyncpa [#allocation4], 1 }
 0x78d   :  { %954 = vsyncpa [#allocation4 + $0x1], 1 }

// kernel: transformer_forward.2
= control target key start
LH: loop header
LB: loop body
LE: loop exit
PB: predicated region body
PF: predicated region fallthrough
CT: control target
= control target key end

     0   :  { %s1603_s0 = inlined_call_operand.vmem [shape: f32[2,8,32], index: 0, kind: input, shape index: {}, may-alias: {0,12}]   ;;  %s1604_s1 = inlined_call_operand.vmem [shape: f32[1,32], index: 1, kind: input, shape index: {}]   ;;  %s1605_s2 = inlined_call_operand.vmem [shape: f32[1,32], index: 2, kind: input, shape index: {}]   ;;  %s1606_s3 = inlined_call_operand.vmem [shape: bf16[32,96], index: 3, kind: input, shape index: {}]   ;;  %s1607_s4 = inlined_call_operand.vmem [shape: bf16[32,32], index: 4, kind: input, shape index: {}]   ;;  %s1608_s5 = inlined_call_operand.hbm [shape: f32[1,32], index: 5, kind: input, shape index: {}]   ;;  %s1609_s6 = inlined_call_operand.vmem [shape: f32[1,32], index: 6, kind: input, shape index: {}]   ;;  %s1610_s7 = inlined_call_operand.vmem [shape: f32[1,32], index: 7, kind: input, shape index: {}]   ;;  %s1611_s8 = inlined_call_operand.hbm [shape: bf16[32,64], index: 8, kind: input, shape index: {}]   ;;  %s1612_s9 = inlined_call_operand.hbm [shape: f32[1,64], index: 9, kind: input, shape index: {}]   ;;  %s1613_s10 = inlined_call_operand.vmem [shape: bf16[64,32], index: 10, kind: input, shape index: {}]   ;;  %s1614_s11 = inlined_call_operand.hbm [shape: f32[1,32], index: 11, kind: input, shape index: {}]   ;;  %s1615_s12 = inlined_call_operand.vmem [shape: f32[2,8,32], index: 12, kind: output, shape index: {}, may-alias: {0,12}]  }
   0x1   :  { %1616 = sst [smem:[#allocation12_spill]] %s1608_s5 }
   0x2   :  { %17 = vsyncpa [#allocation3], 0 }
   0x3   :  { %18 = vsyncpa [#allocation5], 0 }
   0x4   :  { %19 = vsyncpa [#allocation8], 0  ;;  %s1448_s21 = smov 0  }
   0x5 LB: > { %s354_s24 = sshll.u32 %s1611_s8, 4  ;;  %s1457_s25 = sadd.s32 4294967295, %s1360_s21   ;;  %s1360_s21 = sphi %s1448_s21, %s25_s21   ;;  %s355_s24 = int_to_ptr.hbm [resolvable:$true] %s354_s24 }
   0x6   : > { %p1050_p0 = scmp.ge.s32.totalorder %s1360_s21, 1  ;;  %p313_p1 = scmp.lt.s32.totalorder %s1360_s21, 3 }
   0x7   : > { %p1156_p2 = scmp.eq.s32.totalorder %s1457_s25, 0  ;;  %s1362_s27 = smov [#allocation4]  }
   0x8   : > { %p1462_p3 = pnand %p1050_p0, %p313_p1  ;;  %s356_s28 = sshll.u32 %s1362_s27, 4  ;;  %s357_s28 = int_to_ptr.vmem [resolvable:$true] %s356_s28 }
   0x9   : > { %s1618_s5 = sld [smem:[#allocation12_spill]]  ;;  %s1363_s15 = smov [#allocation2]  }
   0xa   : > { %p1143_p4 = pneg %p1462_p3  ;;  %s339_s16 = sshll.u32 %s1363_s15, 4  ;;  %s340_s16 = int_to_ptr.vmem [resolvable:$true] %s339_s16 }
   0xb   : > { %s369_s19 = sshll.u32 %s1612_s9, 4  ;;  %s1364_s20 = smov 64   ;;  %s370_s19 = int_to_ptr.hbm [resolvable:$true] %s369_s19 }
   0xc   : > { %p1473_p5 = pnand %p1156_p2, %p1143_p4  ;;  %s1365_s22 = smov 4  }
   0xd   : > { %s1366_s23 = smov [#allocation6]   ;;  %s1367_s15 = smov [#allocation7]  }
   0xe   : > { %1149 = dma.hbm_to_vmem [thread:$0]  (!%p1473_p5), %s355_s24, 256, %s357_s28, [#allocation5], %s1364_s20, %s1364_s20, %s1365_s22  }
   0xf   : > { %s337_s13 = sshll.u32 %s1618_s5, 4  ;;  %s371_s27 = sshll.u32 %s1366_s23, 4  ;;  %s338_s13 = int_to_ptr.hbm [resolvable:$true] %s337_s13  ;;  %s372_s27 = int_to_ptr.vmem [resolvable:$true] %s371_s27 }
  0x10   : > { %1146 = dma.hbm_to_vmem [thread:$0]  (!%p1473_p5), %s338_s13, 16, %s340_s16, [#allocation3]  }
  0x11   : > { %s384_s5 = sshll.u32 %s1614_s11, 4  ;;  %s386_s17 = sshll.u32 %s1367_s15, 4  ;;  %s385_s5 = int_to_ptr.hbm [resolvable:$true] %s384_s5  ;;  %s387_s17 = int_to_ptr.vmem [resolvable:$true] %s386_s17 }
  0x12   : > { %1152 = dma.hbm_to_vmem [thread:$0]  (!%p1473_p5), %s370_s19, 16, %s372_s27, [#allocation5]  }
  0x13   : > { %1155 = dma.hbm_to_vmem [thread:$0]  (!%p1473_p5), %s385_s5, 16, %s387_s17, [#allocation8]  }
  0x14   : > { %406 = sbr.rel (%p1462_p3) target bundleno = 1898 (0x76a), region = 68 }
  0x19   : > { %1347 = dma.done.wait (%p1156_p2), [#allocation3], 16  }
  0x1a   : > { %1349 = vsyncadd (%p1156_p2), [#allocation3], 4294967280 }
  0x1b   : > { %1351 = dma.done.wait (%p1156_p2), [#allocation5], 272  }
  0x1c   : > { %1353 = vsyncadd (%p1156_p2), [#allocation5], 4294967024 }
  0x1d   : > { %1355 = dma.done.wait (%p1156_p2), [#allocation8], 16  }
  0x1e   : > { %1357 = vsyncadd (%p1156_p2), [#allocation8], 4294967280  ;;  %p462_p6 = scmp.lt.s32.totalorder %s1457_s25, 1  ;;  %vm474_vm0 = vcmask 261120   ;;  %v1368_v2 = vmov 32.0   ;;  %v1118_v14 = vld [vmem:[%s1606_s3 + $0x8] sm:$0xff] }
  0x1f   : > { %1200 = vrcp.f32 %v1368_v2  ;;  %538 = vmatpush.bf16.msra.mxu0 %v1118_v14  ;;  %v1117_v15 = vld [vmem:[%s1606_s3] sm:$0xff]  ;;  %s1369_s27 = smov 104   ;;  %s1370_s29 = smov 120   ;;  %vm551_vm5 = vcmask 64512   ;;  %vm588_vm6 = vcmask 1043456   ;;  %vm786_vm7 = vcmask 130048  }
  0x20   : > { %s1621_s25 = smov (!%p462_p6, %s1457_s25), 1  ;;  %v1193_v25 = vld [vmem:[%s1604_s1] ss:$0 sm:$0xff]  ;;  %s1371_s30 = smov 96   ;;  %vm788_vm8 = vcmask 195584   ;;  %vm935_vm12 = vcmask 523264  }
  0x21   : > { %s1061_s5 = sshll.u32 %s1621_s25, 3  ;;  %v1194_v28 = vld [vmem:[%s1605_s2] ss:$0 sm:$0xff]  ;;  %s1372_s15 = smov 72  }
  0x22   : > { %s465_s28 = scalar_lea.vmem %s1603_s0, %s1061_s5  ;;  %s1373_s17 = smov 88  }
  0x23   : > { %v1515_v0 = vld [vmem:[%s465_s28] sm:$0xff]  ;;  %539 = vmatpush.bf16.msra.mxu0 %v1117_v15  ;;  %s1374_s24 = smov 112   ;;  %s1375_s26 = smov 80  }
  0x24   : > { %v475_v1 = vsel %vm474_vm0, %v1515_v0, 0.0  ;;  %s1376_s28 = smov 64   ;;  %s1377_s13 = smov 56  }
  0x25   : > { %476 = vadd.xlane.f32.xlu0 %v475_v1  ;;  %v1201_v3 = vpop.eup %1200  ;;  %s1378_s14 = smov 40   ;;  %s1379_s16 = smov 48  }
  0x26   : > { %v479_v4 = vmul.f32 32.0, %v1201_v3  ;;  %vm483_vm1 = vweird.f32 %v1201_v3  ;;  %s1380_s18 = smov 8   ;;  %s1381_s19 = smov 16  }
  0x27   : > { %s1382_s20 = smov 24  }
  0x28   : > { %v480_v5 = vsub.f32 1.0, %v479_v4 }
  0x2a   : > { %v481_v6 = vmul.f32 %v1201_v3, %v480_v5 }
  0x2c   : > { %v482_v7 = vadd.f32 %v1201_v3, %v481_v6 }
  0x2e   : > { %v1519_v8 = vsel %vm483_vm1, %v1201_v3, %v482_v7 }
  0x98   : > { %v477_v9 = vpop.xlane.xlu0 %476 }
  0x99   : > { %v485_v10 = vmul.f32 %v1519_v8, %v477_v9 }
  0x9b   : > { %v486_v11 = vsub.f32 %v1515_v0, %v485_v10 }
  0x9d   : > { %v487_v12 = vmul.f32 %v486_v11, %v486_v11 }
  0x9f   : > { %v488_v13 = vsel %vm474_vm0, %v487_v12, 0.0 }
  0xa0   : > { %489 = vadd.xlane.f32.xlu0 %v488_v13 }
 0x113   : > { %v490_v16 = vpop.xlane.xlu0 %489 }
 0x114   : > { %v491_v17 = vmul.f32 %v490_v16, %v1519_v8 }
 0x116   : > { %v492_v18 = vadd.f32 1e-05, %v491_v17 }
 0x118   : > { %1202 = vrsqrt.f32 %v492_v18  ;;  %vm499_vm3 = vweird.f32 %v492_v18 }
 0x11e   : > { %v1203_v19 = vpop.eup %1202 }
 0x11f   : > { %v494_v20 = vmul.f32 %v1203_v19, %v492_v18  ;;  %vm500_vm2 = vweird.f32 %v1203_v19 }
 0x120   : > { %vm501_vm4 = vmor %vm499_vm3, %vm500_vm2 }
 0x121   : > { %v495_v21 = vmul.f32 %v1203_v19, %v494_v20 }
 0x123   : > { %v496_v22 = vmul.f32 0.5, %v495_v21 }
 0x125   : > { %v497_v23 = vsub.f32 1.5, %v496_v22 }
 0x127   : > { %v498_v24 = vmul.f32 %v1203_v19, %v497_v23 }
 0x129   : > { %v502_v26 = vsel %vm501_vm4, %v1203_v19, %v498_v24 }
 0x12a   : > { %v503_v27 = vmul.f32 %v502_v26, %v486_v11 }
 0x12c   : > { %v507_v29 = vmul.f32 %v1193_v25, %v503_v27 }
 0x12e   : > { %v511_v30 = vadd.f32 %v1194_v28, %v507_v29 }
 0x130   : > { %v512_v31 = vpack.c.bf16 %v511_v30, %v511_v30 }
 0x132   : > { %1071 = vmatmul.msk.bf16.vlgmr.msra.gmra.mxu0 %vm474_vm0, %v512_v31 }
 0x1af   : > { %v541_v32 = vpop.f32.mrf.mxu0 }
 0x1b0   : > { %v545_v33 = vpack.c.bf16 %v541_v32, %v541_v32 }
 0x1b2   : > { %v547_v34 = vunpack.c.l.b16 %v545_v33 }
 0x1b4   : > { %v548_v35 = vpack.c.b16 %v547_v34, %v547_v34 }
 0x1b6   : > { %717 = vrot.lane.b32.xlu0 %v548_v35, %s1369_s27  ;;  %605 = vrot.lane.b32.xlu2 %v548_v35, %s1370_s29  ;;  %s469_s27 = scalar_lea.vmem %s1615_s12, %s1061_s5 }
 0x1b7   : > { %549 = vrot.lane.b32.xlu1 %v548_v35, %s1371_s30  ;;  %v543_v36 = vpop.f32.mrf.mxu0 }
 0x1be   : > { %719 = vrot.lane.b32.xlu2 %v548_v35, %s1372_s15 }
 0x1bf   : > { %607 = vrot.lane.b32.xlu1 %v548_v35, %s1373_s17 }
 0x1c6   : > { %661 = vrot.lane.b32.xlu2 %v548_v35, %s1374_s24 }
 0x1c7   : > { %663 = vrot.lane.b32.xlu1 %v548_v35, %s1375_s26 }
 0x210   : > { %v606_v37 = vpop.permute.xlu2 %605 }
 0x218   : > { %v720_v40 = vpop.permute.xlu2 %719 }
 0x219   : > { %v725_v43 = vsel %vm551_vm5, %v720_v40, 0 }
 0x220   : > { %v662_v46 = vpop.permute.xlu2 %661 }
 0x228   : > { %v718_v47 = vpop.permute.xlu0 %717 }
 0x229   : > { %v550_v38 = vpop.permute.xlu1 %549 }
 0x22a   : > { %v556_v39 = vsel %vm551_vm5, %v550_v38, 0 }
 0x22b   : > { %565 = vmatpush.bf16.xpose.msra.mxu1 %v556_v39 }
 0x231   : > { %v608_v41 = vpop.permute.xlu1 %607 }
 0x232   : > { %1072 = vmatmul.msk.bf16.vlgmr.msra.gmra.mxu1 %vm551_vm5, %v545_v33  ;;  %v613_v42 = vsel %vm551_vm5, %v608_v41, 0 }
 0x233   : > { %622 = vmatpush.bf16.xpose.msra.mxu3 %v613_v42 }
 0x239   : > { %v664_v44 = vpop.permute.xlu1 %663 }
 0x23a   : > { %1074 = vmatmul.msk.bf16.vlgmr.msra.gmra.mxu3 %vm551_vm5, %v606_v37  ;;  %v669_v45 = vsel %vm551_vm5, %v664_v44, 0 }
 0x23b   : > { %734 = vmatpush.bf16.xpose.msrb.mxu3 %v725_v43  ;;  %678 = vmatpush.bf16.xpose.msrb.mxu0 %v669_v45 }
 0x242   : > { %1076 = vmatmul.msk.bf16.vlgmr.msrb.gmra.mxu0 %vm551_vm5, %v662_v46 }
 0x24a   : > { %1078 = vmatmul.msk.bf16.vlgmr.msrb.gmra.mxu3 %vm551_vm5, %v718_v47 }
 0x2af   : > { %v567_v48 = vpop.f32.mrf.mxu1 }
 0x2b0   : > { %v571_v49 = vsel %vm551_vm5, %v567_v48, -inf }
 0x2b1   : > { %572 = vmax.xlane.f32.xlu1 %v571_v49 }
 0x2b7   : > { %v569_v50 = vpop.f32.mrf.mxu1 }
 0x2b8   : > { %v1120_v50 = vld [vmem:[%s1607_s4 + $0x8] sm:$0xff] }
 0x2b9   : > { %820 = vmatpush.bf16.msra.mxu0 %v1120_v50 }
 0x2bd   : > { %v624_v51 = vpop.f32.mrf.mxu3 }
 0x2be   : > { %v628_v52 = vsel %vm551_vm5, %v624_v51, -inf }
 0x2bf   : > { %629 = vmax.xlane.f32.xlu2 %v628_v52  ;;  %v680_v53 = vpop.f32.mrf.mxu0 }
 0x2c0   : > { %v684_v55 = vsel %vm551_vm5, %v680_v53, -inf }
 0x2c5   : > { %v626_v54 = vpop.f32.mrf.mxu3 }
 0x2c7   : > { %685 = vmax.xlane.f32.xlu2 %v684_v55  ;;  %v682_v56 = vpop.f32.mrf.mxu0 }
 0x2cd   : > { %v736_v57 = vpop.f32.mrf.mxu3 }
 0x2ce   : > { %v740_v58 = vsel %vm551_vm5, %v736_v57, -inf }
 0x2cf   : > { %741 = vmax.xlane.f32.xlu0 %v740_v58 }
 0x2d5   : > { %v738_v59 = vpop.f32.mrf.mxu3 }
 0x2d6   : > { %v1195_v59 = vld [vmem:[#allocation2] ss:$0 sm:$0xff] }
 0x2df   : > { %583 = vrot.lane.b32.xlu2 %v548_v35, %s1376_s28 }
 0x2e3   : > { %640 = vrot.lane.b32.xlu0 %v548_v35, %s1377_s13 }
 0x2e7   : > { %752 = vrot.lane.b32.xlu2 %v548_v35, %s1378_s14 }
 0x2eb   : > { %696 = vrot.lane.b32.xlu0 %v548_v35, %s1379_s16 }
 0x324   : > { %v573_v60 = vpop.xlane.xlu1 %572 }
 0x325   : > { %v574_v61 = vsub.f32 %v567_v48, %v573_v60 }
 0x327   : > { %v575_v62 = vmul.f32 1.442695, %v574_v61 }
 0x329   : > { %1204 = vpow2.f32 %v575_v62 }
 0x32f   : > { %v1205_v63 = vpop.eup %1204 }
 0x330   : > { %v577_v1 = vsel %vm551_vm5, %v1205_v63, 0.0 }
 0x331   : > { %578 = vadd.xlane.f32.xlu1 %v577_v1 }
 0x332   : > { %v630_v2 = vpop.xlane.xlu2 %629 }
 0x333   : > { %v631_v3 = vsub.f32 %v624_v51, %v630_v2  ;;  %v1119_v51 = vld [vmem:[%s1607_s4] sm:$0xff] }
 0x334   : > { %821 = vmatpush.bf16.msra.mxu0 %v1119_v51 }
 0x335   : > { %v632_v4 = vmul.f32 1.442695, %v631_v3 }
 0x337   : > { %1206 = vpow2.f32 %v632_v4 }
 0x33a   : > { %v686_v5 = vpop.xlane.xlu2 %685 }
 0x33b   : > { %v687_v13 = vsub.f32 %v680_v53, %v686_v5 }
 0x33d   : > { %v1207_v6 = vpop.eup %1206  ;;  %v688_v15 = vmul.f32 1.442695, %v687_v13 }
 0x33e   : > { %v634_v7 = vsel %vm551_vm5, %v1207_v6, 0.0 }
 0x33f   : > { %635 = vadd.xlane.f32.xlu1 %v634_v7  ;;  %v1122_v7 = vld [vmem:[#allocation4 + $0x8] sm:$0xff] }
 0x342   : > { %v742_v9 = vpop.xlane.xlu0 %741  ;;  %v584_v10 = vpop.permute.xlu2 %583 }
 0x343   : > { %v743_v11 = vsub.f32 %v736_v57, %v742_v9  ;;  %v590_v12 = vsel %vm588_vm6, %v584_v10, 0  ;;  %v1121_v9 = vld [vmem:[#allocation4] sm:$0xff] }
 0x344   : > { %599 = vmatpush.bf16.msra.mxu2 %v590_v12  ;;  %v1125_v12 = vld [vmem:[%s1613_s10 + $0x10] sm:$0xff] }
 0x345   : > { %v744_v14 = vmul.f32 1.442695, %v743_v11 }
 0x347   : > { %1208 = vpow2.f32 %v744_v14  ;;  %v1124_v14 = vld [vmem:[%s1613_s10 + $0x8] sm:$0xff] }
 0x348   : > { %1210 = vpow2.f32 %v688_v15 }
 0x34a   : > { %v753_v27 = vpop.permute.xlu2 %752 }
 0x34b   : > { %v758_v29 = vsel %vm588_vm6, %v753_v27, 0  ;;  %v1123_v27 = vld [vmem:[%s1613_s10] sm:$0xff] }
 0x34d   : > { %v1209_v16 = vpop.eup %1208 }
 0x34e   : > { %v746_v17 = vsel %vm551_vm5, %v1209_v16, 0.0  ;;  %v1211_v18 = vpop.eup %1210 }
 0x34f   : > { %747 = vadd.xlane.f32.xlu1 %v746_v17  ;;  %v690_v20 = vsel %vm551_vm5, %v1211_v18, 0.0 }
 0x355   : > { %v641_v19 = vpop.permute.xlu0 %640 }
 0x356   : > { %v646_v21 = vsel %vm588_vm6, %v641_v19, 0 }
 0x357   : > { %691 = vadd.xlane.f32.xlu1 %v690_v20  ;;  %655 = vmatpush.bf16.msrb.mxu2 %v646_v21  ;;  %v1196_v20 = vld [vmem:[%s1609_s6] ss:$0 sm:$0xff] }
 0x35d   : > { %v697_v22 = vpop.permute.xlu0 %696 }
 0x35e   : > { %v702_v23 = vsel %vm588_vm6, %v697_v22, 0 }
 0x35f   : > { %711 = vmatpush.bf16.msrb.mxu1 %v702_v23  ;;  %v1197_v23 = vld [vmem:[%s1610_s7] ss:$0 sm:$0xff] }
 0x363   : > { %890 = vmatpush.bf16.msra.mxu1 %v1122_v7 }
 0x367   : > { %891 = vmatpush.bf16.msra.mxu1 %v1121_v9 }
 0x3a4   : > { %v579_v24 = vpop.xlane.xlu1 %578 }
 0x3a5   : > { %1212 = vrcp.f32 %v579_v24 }
 0x3ab   : > { %v1213_v25 = vpop.eup %1212 }
 0x3ac   : > { %v581_v26 = vmul.f32 %v1213_v25, %v1205_v63 }
 0x3ae   : > { %v582_v28 = vpack.c.bf16 %v581_v26, %v581_v26 }
 0x3b0   : > { %1073 = vmatmul.msk.bf16.vlgmr.msra.gmra.mxu2 %vm551_vm5, %v582_v28  ;;  %v1198_v28 = vld [vmem:[#allocation6] ss:$0 sm:$0xff] }
 0x3b1   : > { %767 = vmatpush.bf16.msra.mxu2 %v758_v29 }
 0x3b2   : > { %v636_v30 = vpop.xlane.xlu1 %635 }
 0x3b3   : > { %1214 = vrcp.f32 %v636_v30 }
 0x3b9   : > { %v1215_v31 = vpop.eup %1214 }
 0x3ba   : > { %v638_v32 = vmul.f32 %v1215_v31, %v1207_v6 }
 0x3bc   : > { %v639_v33 = vpack.c.bf16 %v638_v32, %v638_v32 }
 0x3c0   : > { %1075 = vmatmul.msk.bf16.vlgmr.msrb.gmra.mxu2 %vm551_vm5, %v639_v33 }
 0x3c2   : > { %v748_v34 = vpop.xlane.xlu1 %747 }
 0x3c3   : > { %1216 = vrcp.f32 %v748_v34  ;;  %v1199_v34 = vld [vmem:[#allocation7] ss:$0 sm:$0xff] }
 0x3c9   : > { %v1217_v35 = vpop.eup %1216 }
 0x3ca   : > { %v750_v36 = vmul.f32 %v1217_v35, %v1209_v16  ;;  %v692_v37 = vpop.xlane.xlu1 %691 }
 0x3cb   : > { %1218 = vrcp.f32 %v692_v37 }
 0x3cc   : > { %v751_v38 = vpack.c.bf16 %v750_v36, %v750_v36 }
 0x3d0   : > { %1079 = vmatmul.msk.bf16.vlgmr.msra.gmra.mxu2 %vm551_vm5, %v751_v38 }
 0x3d1   : > { %v1219_v39 = vpop.eup %1218 }
 0x3d2   : > { %v694_v40 = vmul.f32 %v1219_v39, %v1211_v18 }
 0x3d4   : > { %v695_v41 = vpack.c.bf16 %v694_v40, %v694_v40 }
 0x3d6   : > { %1077 = vmatmul.msk.bf16.vlgmr.msrb.gmra.mxu1 %vm551_vm5, %v695_v41 }
 0x433   : > { %v601_v42 = vpop.f32.mrf.mxu2 }
 0x43b   : > { %v603_v43 = vpop.f32.mrf.mxu2 }
 0x443   : > { %v657_v44 = vpop.f32.mrf.mxu2 }
 0x444   : > { %774 = vrot.lane.b32.xlu1 %v657_v44, %s1380_s18 }
 0x44b   : > { %v659_v45 = vpop.f32.mrf.mxu2 }
 0x453   : > { %v713_v46 = vpop.f32.mrf.mxu1  ;;  %v769_v47 = vpop.f32.mrf.mxu2 }
 0x454   : > { %778 = vrot.lane.b32.xlu2 %v713_v46, %s1381_s19  ;;  %782 = vrot.lane.b32.xlu0 %v769_v47, %s1382_s20 }
 0x45b   : > { %v715_v48 = vpop.f32.mrf.mxu1  ;;  %v771_v49 = vpop.f32.mrf.mxu2 }
 0x4ae   : > { %v779_v54 = vpop.permute.xlu2 %778 }
 0x4b6   : > { %v775_v52 = vpop.permute.xlu1 %774 }
 0x4b7   : > { %v785_v53 = vsel %vm551_vm5, %v601_v42, %v775_v52 }
 0x4b8   : > { %v787_v56 = vsel %vm786_vm7, %v785_v53, %v779_v54 }
 0x4c6   : > { %v783_v55 = vpop.permute.xlu0 %782 }
 0x4c7   : > { %v789_v57 = vsel %vm788_vm8, %v787_v56, %v783_v55 }
 0x4c8   : > { %v790_v58 = vpack.c.bf16 %v789_v57, %v789_v57 }
 0x4ca   : > { %1088 = vmatmul.msk.bf16.vlgmr.msra.gmra.mxu0 %vm474_vm0, %v790_v58 }
 0x547   : > { %v823_v60 = vpop.f32.mrf.mxu0 }
 0x548   : > { %v824_v61 = vadd.f32 %v1195_v59, %v823_v60 }
 0x54a   : > { %v827_v62 = vadd.f32 %v824_v61, %v1515_v0  ;;  %v1126_v0 = vld [vmem:[%s1613_s10 + $0x18] sm:$0xff] }
 0x54b   : > { %943 = vmatpush.bf16.msra.mxu3 %v1126_v0 }
 0x54c   : > { %v830_v63 = vsel %vm474_vm0, %v827_v62, 0.0 }
 0x54d   : > { %831 = vadd.xlane.f32.xlu2 %v830_v63 }
 0x54f   : > { %v825_v1 = vpop.f32.mrf.mxu0  ;;  %944 = vmatpush.bf16.msra.mxu3 %v1125_v12 }
 0x553   : > { %945 = vmatpush.bf16.msra.mxu3 %v1124_v14 }
 0x557   : > { %946 = vmatpush.bf16.msra.mxu3 %v1123_v27 }
 0x5c0   : > { %v832_v2 = vpop.xlane.xlu2 %831 }
 0x5c1   : > { %v833_v3 = vmul.f32 %v832_v2, %v1519_v8 }
 0x5c3   : > { %v834_v4 = vsub.f32 %v827_v62, %v833_v3 }
 0x5c5   : > { %v835_v5 = vmul.f32 %v834_v4, %v834_v4 }
 0x5c7   : > { %v836_v6 = vsel %vm474_vm0, %v835_v5, 0.0 }
 0x5c8   : > { %837 = vadd.xlane.f32.xlu0 %v836_v6 }
 0x63b   : > { %v838_v10 = vpop.xlane.xlu0 %837 }
 0x63c   : > { %v839_v11 = vmul.f32 %v838_v10, %v1519_v8 }
 0x63e   : > { %v840_v13 = vadd.f32 1e-05, %v839_v11 }
 0x640   : > { %1220 = vrsqrt.f32 %v840_v13  ;;  %vm847_vm10 = vweird.f32 %v840_v13 }
 0x646   : > { %v1221_v15 = vpop.eup %1220 }
 0x647   : > { %v842_v16 = vmul.f32 %v1221_v15, %v840_v13  ;;  %vm848_vm9 = vweird.f32 %v1221_v15 }
 0x648   : > { %vm849_vm11 = vmor %vm847_vm10, %vm848_vm9 }
 0x649   : > { %v843_v17 = vmul.f32 %v1221_v15, %v842_v16 }
 0x64b   : > { %v844_v18 = vmul.f32 0.5, %v843_v17 }
 0x64d   : > { %v845_v19 = vsub.f32 1.5, %v844_v18 }
 0x64f   : > { %v846_v8 = vmul.f32 %v1221_v15, %v845_v19 }
 0x651   : > { %v850_v21 = vsel %vm849_vm11, %v1221_v15, %v846_v8 }
 0x652   : > { %v851_v22 = vmul.f32 %v850_v21, %v834_v4 }
 0x654   : > { %v855_v24 = vmul.f32 %v1196_v20, %v851_v22 }
 0x656   : > { %v859_v25 = vadd.f32 %v1197_v23, %v855_v24 }
 0x658   : > { %v860_v26 = vpack.c.bf16 %v859_v25, %v859_v25 }
 0x65a   : > { %1097 = vmatmul.msk.bf16.vlgmr.msra.gmra.mxu1 %vm474_vm0, %v860_v26 }
 0x6d7   : > { %v893_v29 = vpop.f32.mrf.mxu1 }
 0x6d8   : > { %v894_v30 = vadd.f32 %v1198_v28, %v893_v29 }
 0x6da   : > { %v897_v31 = vmax.f32 %v894_v30, 0.0 }
 0x6dc   : > { %v898_v32 = vpack.c.bf16 %v897_v31, %v897_v31 }
 0x6de   : > { %1114 = vmatmul.msk.bf16.vlgmr.msra.gmra.mxu3 %vm935_vm12, %v898_v32 }
 0x6df   : > { %v895_v33 = vpop.f32.mrf.mxu1 }
 0x761   : > { %v948_v35 = vpop.f32.mrf.mxu3 }
 0x762   : > { %v949_v36 = vadd.f32 %v1199_v34, %v948_v35 }
 0x764   : > { %v952_v37 = vadd.f32 %v949_v36, %v827_v62 }
 0x766   : > { %953 = vst.msk [vmem:[%s469_s27] sm:$0xff] %vm474_vm0, %v952_v37 }
 0x769   : > { %v950_v38 = vpop.f32.mrf.mxu3 }
 0x76a PF: > { %s25_s21 = sadd.s32 1, %s1360_s21  }
 0x76b   : > { %p22_p7 = scmp.ge.s32.totalorder %s25_s21, 4  }
 0x76d   :  { %24 = sbr.rel (!%p22_p7) target bundleno = 5 (0x5), region = 115 }
 0x772   :  { %973 = vsyncpa [#allocation3], 1 }
 0x773   :  { %975 = vsyncpa [#allocation3 + $0x1], 1 }
 0x774   :  { %976 = vsyncpa [#allocation5], 1 }
 0x775   :  { %977 = vsyncpa [#allocation8], 1 }

</bundles_post_ra>
